<compile_context>
chip_gen: v6e
topology: v6e:2x2x1
jax: 0.10.0
libtpu: 0.0.40
codegen_flags: <defaults>
</compile_context>

<pallas_src>
import numpy as np

import jax
import jax.numpy as jnp
from jax import lax
from jax.experimental import pallas as pl
from jax.experimental.pallas import tpu as pltpu

SPATIAL_SCALE = 0.03125     # 1/32, as in NetForTraining
C_FEAT = 2048               # resnet101 output channels
ATT_HIDDEN = 64             # conv_att_1 output channels
ATT_PAD = 128               # lane-dense attention width (region half | context half)
NUM_CLASSES = 1000          # fc output
NCLS_PAD = 1024             # lane-dense padded fc output
RMAC_LEVELS = 5
TR = 16                     # rois per grid tile (bf16 (16,128) output tile)


# --------------------------------------------------------------------------
# Host-side glue: R-MAC region generation (mirrors the original numpy code)
# --------------------------------------------------------------------------
def get_rmac_region_coordinates(H, W, L):
    ovr = 0.4
    steps = np.array((2, 3, 4, 5, 6, 7), dtype=np.float32)
    w = np.minimum(H, W)
    b = (np.maximum(H, W) - w) / (steps - 1)
    idx = np.argmin(np.abs(((w ** 2 - w * b) / w ** 2) - ovr)) + 1
    Wd, Hd = 0, 0
    if H < W:
        Wd = idx
    elif H > W:
        Hd = idx
    regions_xywh = []
    for l in range(1, L + 1):
        wl = np.floor(2 * w / (l + 1))
        wl2 = np.floor(wl / 2 - 1)
        b = (W - wl) / (l + Wd - 1) if (l + Wd - 1) > 0 else 0
        cenW = np.floor(wl2 + b * np.arange(l - 1 + Wd + 1)) - wl2
        b = (H - wl) / (l + Hd - 1) if (l + Hd - 1) > 0 else 0
        cenH = np.floor(wl2 + b * np.arange(l - 1 + Hd + 1)) - wl2
        for i_ in cenH:
            for j_ in cenW:
                regions_xywh.append([j_, i_, wl, wl])
    for i in range(len(regions_xywh)):
        for j in range(4):
            regions_xywh[i][j] = int(round(regions_xywh[i][j]))
        if regions_xywh[i][0] + regions_xywh[i][2] > W:
            regions_xywh[i][0] -= ((regions_xywh[i][0] + regions_xywh[i][2]) - W)
        if regions_xywh[i][1] + regions_xywh[i][3] > H:
            regions_xywh[i][1] -= ((regions_xywh[i][1] + regions_xywh[i][3]) - H)
    return np.array(regions_xywh, dtype=np.float32)


def pack_regions_for_network(all_regions):
    n_regs = int(np.sum([len(e) for e in all_regions]))
    R = np.zeros((n_regs, 5), dtype=np.float32)
    cnt = 0
    for i, r in enumerate(all_regions):
        R[cnt:cnt + r.shape[0], 0] = i
        R[cnt:cnt + r.shape[0], 1:] = r
        cnt += r.shape[0]
    # xywh -> xyxy (inclusive end)
    R[:, 3] = R[:, 1] + R[:, 3] - 1
    R[:, 4] = R[:, 2] + R[:, 4] - 1
    return R


def compute_roi_meta(rois, spatial_scale, Hf, Wf):
    """Per-roi [batch, hstart, hend, wstart, wend] on the feature grid (pooled 1x1 case)."""
    N = rois.shape[0]
    meta = np.zeros((5, N), dtype=np.int32)
    for i in range(N):
        b = int(rois[i, 0])
        x0, y0, x1, y1 = np.round(rois[i, 1:] * spatial_scale).astype(int)
        roi_w = max(x1 - x0 + 1, 1)
        roi_h = max(y1 - y0 + 1, 1)
        hstart = min(Hf, max(0, 0 + y0))
        hend = min(Hf, max(0, roi_h + y0))
        wstart = min(Wf, max(0, 0 + x0))
        wend = min(Wf, max(0, roi_w + x0))
        meta[:, i] = [b, hstart, hend, wstart, wend]
    return meta


# --------------------------------------------------------------------------
# In-kernel helpers
# --------------------------------------------------------------------------
def _softplus(x):
    # matches torch.nn.Softplus(beta=1, threshold=20); log1p for small-x precision
    return jnp.where(x > 20.0, x, jnp.log1p(jnp.exp(jnp.minimum(x, 20.0))))


# --------------------------------------------------------------------------
# Kernel 1: backbone stand-in (strided-patch linear projection, bf16 MXU, M-tiled)
# --------------------------------------------------------------------------
def _backbone_kernel(p_ref, w_ref, b_ref, o_ref):
    acc = jnp.dot(p_ref[...], w_ref[...], preferred_element_type=jnp.float32)
    o_ref[...] = (acc + b_ref[...]).astype(o_ref.dtype)


def backbone_project(patches_bf16, wb_bf16, bb_f32, *, tm):
    M_pad, K_pad = patches_bf16.shape
    N = wb_bf16.shape[1]
    flops = 2 * M_pad * K_pad * N
    bytes_acc = M_pad * K_pad * 2 + K_pad * N * 2 + N * 4 + M_pad * N * 2
    return pl.pallas_call(
        _backbone_kernel,
        grid_spec=pltpu.PrefetchScalarGridSpec(
            num_scalar_prefetch=0,
            grid=(M_pad // tm,),
            in_specs=[pl.BlockSpec((tm, K_pad), lambda i: (i, 0)),
                      pl.BlockSpec((K_pad, N), lambda i: (0, 0)),
                      pl.BlockSpec((1, N), lambda i: (0, 0))],
            out_specs=pl.BlockSpec((tm, N), lambda i: (i, 0))),
        out_shape=jax.ShapeDtypeStruct((M_pad, N), jnp.bfloat16),
        compiler_params=pltpu.CompilerParams(
            dimension_semantics=("parallel",),
            vmem_limit_bytes=32 * 1024 * 1024),
        cost_estimate=pl.CostEstimate(flops=flops, transcendentals=0,
                                      bytes_accessed=bytes_acc),
    )(patches_bf16, wb_bf16, bb_f32)


# --------------------------------------------------------------------------
# Kernel 2: per-image precompute, single fused conv_att_1 matmul (2048 -> 128 lanes)
#   lanes [0:64]  = f @ w1a   (region branch, per spatial position)
#   lanes [64:128]= f @ w1b   (context branch, per spatial position)
# and the per-image mean of that projection (context = mean of lanes [64:128]).
# --------------------------------------------------------------------------
def _context_kernel(feat_ref, wcat_ref, fw1_ref, cmean_ref):
    f = feat_ref[0]                                                      # (S, C) bf16
    fw = jnp.dot(f, wcat_ref[...], preferred_element_type=jnp.float32)   # (S, 128) f32
    fw1_ref[0] = fw.astype(jnp.bfloat16)
    cmean_ref[0] = jnp.mean(fw, axis=0, keepdims=True)                   # (1, 128) f32


def context_precompute(feats_bf16, wcat_bf16):
    B, S_sp, C = feats_bf16.shape
    gs = pltpu.PrefetchScalarGridSpec(
        num_scalar_prefetch=0,
        grid=(B,),
        in_specs=[pl.BlockSpec((1, S_sp, C), lambda b: (b, 0, 0)),
                  pl.BlockSpec((C, ATT_PAD), lambda b: (0, 0))],
        out_specs=[pl.BlockSpec((1, S_sp, ATT_PAD), lambda b: (b, 0, 0)),
                   pl.BlockSpec((1, 1, ATT_PAD), lambda b: (b, 0, 0))])
    return pl.pallas_call(
        _context_kernel,
        grid_spec=gs,
        out_shape=(jax.ShapeDtypeStruct((B, S_sp, ATT_PAD), jnp.bfloat16),
                   jax.ShapeDtypeStruct((B, 1, ATT_PAD), jnp.float32)),
        compiler_params=pltpu.CompilerParams(dimension_semantics=("parallel",)),
    )(feats_bf16, wcat_bf16)


# --------------------------------------------------------------------------
# Kernel 3: fused RoIPool(1,1) bf16 max + context-aware regional attention.
# Per TR-roi tile: per-roi masked max (bf16) stored row-by-row into the output block,
# then the mean/attention path vectorized over the tile with one MXU matmul,
# and one read-modify-write applies the attention weights.
# --------------------------------------------------------------------------
def make_roi_att_kernel(tr, S_sp, Wf):
    def kernel(meta_ref, feat_ref, fw1_ref, ctx_ref, b1_ref, w2_ref, b2_ref, out_ref):
        base = pl.program_id(0) * tr
        fb = feat_ref[0]                # (S, C)    bf16
        fw1 = fw1_ref[0]                # (S, 128)  bf16 (region proj | context proj)
        ctx = ctx_ref[0]                # (1, 128)  f32  context in lanes [:64], 0 elsewhere
        b1 = b1_ref[...]                # (1, 128)  f32  (padded lanes zero)
        w2 = w2_ref[...]                # (1, 128)  f32  (padded lanes zero)
        b2 = b2_ref[...]                # (1, 1)    f32

        pos_c = lax.broadcasted_iota(jnp.int32, (S_sp, 1), 0)
        hpos_c, wpos_c = pos_c // Wf, pos_c % Wf
        pos_r = lax.broadcasted_iota(jnp.int32, (1, S_sp), 1)
        hpos_r, wpos_r = pos_r // Wf, pos_r % Wf
        neg = jnp.asarray(jnp.finfo(jnp.bfloat16).min, dtype=jnp.bfloat16)

        mask_rows = []
        for r in range(tr):             # static unroll over the tile's rois
            hs = meta_ref[1, base + r]
            he = meta_ref[2, base + r]
            ws = meta_ref[3, base + r]
            we = meta_ref[4, base + r]
            is_empty = jnp.logical_or(he <= hs, we <= ws)

            # RoIPool(1,1): masked max in bf16; one lane-dense (1, 2048) row store
            m_col = ((hpos_c >= hs) & (hpos_c < he) &
                     (wpos_c >= ws) & (wpos_c < we))                          # (S, 1)
            rmax = jnp.max(jnp.where(m_col, fb, neg), axis=0, keepdims=True)  # (1, C) bf16
            rmax = jnp.where(is_empty, jnp.zeros_like(rmax), rmax)
            out_ref[pl.ds(r, 1), :] = rmax

            # row-form roi mask for the vectorized mean/attention path
            m_row = ((hpos_r >= hs) & (hpos_r < he) &
                     (wpos_r >= ws) & (wpos_r < we))                          # (1, S)
            mask_rows.append(m_row.astype(jnp.float32))

        mask = jnp.concatenate(mask_rows, axis=0)                             # (TR, S)
        cnt = jnp.sum(mask, axis=1, keepdims=True)                            # (TR, 1)
        nonempty = (cnt > 0.5).astype(jnp.float32)
        # region-mean branch of conv_att_1 for all TR rois in one MXU matmul
        hsum = jnp.dot(mask.astype(jnp.bfloat16), fw1,
                       preferred_element_type=jnp.float32)                    # (TR, 128)
        hmean = hsum / jnp.maximum(cnt, 1.0)
        # lanes [64:128] of hmean are unused garbage -> killed by w2's zero lanes
        pre = (hmean + ctx) * nonempty + b1          # empty roi -> softplus(b1), as in PyTorch
        h = _softplus(pre)                                                    # (TR, 128)
        att = _softplus(jnp.sum(h * w2, axis=1, keepdims=True) + b2)          # (TR, 1)

        # attention-weighted descriptors: one read-modify-write of the output block
        out_ref[...] = (out_ref[...].astype(jnp.float32) * att).astype(out_ref.dtype)

    return kernel


def roi_pool_attention(feats, fw1, ctx, meta, b1, w2, b2, *, Wf):
    B, S_sp, C = feats.shape
    N_pad = meta.shape[1]
    num_tiles = N_pad // TR
    kernel = make_roi_att_kernel(TR, S_sp, Wf)
    gs = pltpu.PrefetchScalarGridSpec(
        num_scalar_prefetch=1,
        grid=(num_tiles,),
        in_specs=[
            # per-image blocks selected by the scalar-prefetched image index of the tile
            pl.BlockSpec((1, S_sp, C), lambda i, meta: (meta[0, i * TR], 0, 0)),
            pl.BlockSpec((1, S_sp, ATT_PAD), lambda i, meta: (meta[0, i * TR], 0, 0)),
            pl.BlockSpec((1, 1, ATT_PAD), lambda i, meta: (meta[0, i * TR], 0, 0)),
            pl.BlockSpec((1, ATT_PAD), lambda i, meta: (0, 0)),
            pl.BlockSpec((1, ATT_PAD), lambda i, meta: (0, 0)),
            pl.BlockSpec((1, 1), lambda i, meta: (0, 0)),
        ],
        out_specs=pl.BlockSpec((TR, C), lambda i, meta: (i, 0)))
    return pl.pallas_call(
        kernel,
        grid_spec=gs,
        out_shape=jax.ShapeDtypeStruct((N_pad, C), jnp.bfloat16),
        compiler_params=pltpu.CompilerParams(dimension_semantics=("parallel",)),
    )(meta, feats, fw1, ctx, b1, w2, b2)


# --------------------------------------------------------------------------
# Kernel 4: per-image mean over regions (selection matmul, reduction grid over rois
# with an f32 accumulator) + fc (padded to 1024 classes), bf16 MXU operands.
# --------------------------------------------------------------------------
def _agg_fc_kernel(sel_ref, w_ref, wfc_ref, bfc_ref, o_ref, acc_ref):
    @pl.when(pl.program_id(0) == 0)
    def _():
        acc_ref[...] = jnp.zeros_like(acc_ref)

    acc_ref[...] += jnp.dot(sel_ref[...], w_ref[...],
                            preferred_element_type=jnp.float32)

    @pl.when(pl.program_id(0) == pl.num_programs(0) - 1)
    def _():
        logits = jnp.dot(acc_ref[...].astype(jnp.bfloat16), wfc_ref[...],
                         preferred_element_type=jnp.float32)
        o_ref[...] = logits + bfc_ref[...]


def aggregate_and_fc(weighted_bf16, sel_bf16, wfc_t, bfc):
    B, N_pad = sel_bf16.shape
    C = weighted_bf16.shape[1]
    n_cls = wfc_t.shape[1]
    tn = 128 if (N_pad % 128 == 0) else N_pad       # reduction tile over rois
    flops = 2 * B * N_pad * C + 2 * B * C * n_cls
    bytes_acc = (N_pad * C * 2 + B * N_pad * 2 + C * n_cls * 2
                 + n_cls * 4 + B * n_cls * 4)
    return pl.pallas_call(
        _agg_fc_kernel,
        grid_spec=pltpu.PrefetchScalarGridSpec(
            num_scalar_prefetch=0,
            grid=(N_pad // tn,),
            in_specs=[pl.BlockSpec((B, tn), lambda k: (0, k)),
                      pl.BlockSpec((tn, C), lambda k: (k, 0)),
                      pl.BlockSpec((C, n_cls), lambda k: (0, 0)),
                      pl.BlockSpec((1, n_cls), lambda k: (0, 0))],
            out_specs=pl.BlockSpec((B, n_cls), lambda k: (0, 0)),
            scratch_shapes=[pltpu.VMEM((B, C), jnp.float32)]),
        out_shape=jax.ShapeDtypeStruct((B, n_cls), jnp.float32),
        compiler_params=pltpu.CompilerParams(
            dimension_semantics=("arbitrary",),
            vmem_limit_bytes=32 * 1024 * 1024),
        cost_estimate=pl.CostEstimate(flops=flops, transcendentals=0,
                                      bytes_accessed=bytes_acc),
    )(sel_bf16, weighted_bf16, wfc_t, bfc)


# --------------------------------------------------------------------------
# Full forward (NetForTraining.forward)
# --------------------------------------------------------------------------
def net_forward(x, params):
    B, Cin, H, W = x.shape
    Hf, Wf = H // 32, W // 32
    S_sp = Hf * Wf

    # R-MAC regions in input-image coordinates (host-side, as in the original).
    batched_rois = [get_rmac_region_coordinates(H, W, RMAC_LEVELS) for _ in range(B)]
    R_per = batched_rois[0].shape[0]
    R_pad = ((R_per + TR - 1) // TR) * TR          # every TR-roi tile belongs to one image
    N_pad = B * R_pad

    meta = np.zeros((5, N_pad), dtype=np.int32)
    for b in range(B):
        R5 = pack_regions_for_network([batched_rois[b]])
        R5[:, 0] = b
        meta[:, b * R_pad: b * R_pad + R_per] = compute_roi_meta(R5, SPATIAL_SCALE, Hf, Wf)
        meta[0, b * R_pad + R_per:(b + 1) * R_pad] = b   # padded slots: image b, empty bounds
    meta = jnp.asarray(meta)

    # TODO(synk): the original runs a pretrained ResNet-101 (checkpoint load); replaced by a
    # deterministic strided-patch linear projection producing the same (B,2048,H/32,W/32)
    # feature geometry (projection runs in Pallas, bf16 MXU, K padded to 256).
    x_ds = x.reshape(B, Cin, H // 4, 4, W // 4, 4).mean(axis=(3, 5))      # (B,Cin,H/4,W/4)
    patches = x_ds.reshape(B, Cin, Hf, 8, Wf, 8)
    patches = patches.transpose(0, 2, 4, 1, 3, 5).reshape(B * S_sp, Cin * 64)
    K = Cin * 64
    K_pad = params['wb'].shape[0]
    M = B * S_sp
    tm = 256 if M >= 256 else max(8, ((M + 7) // 8) * 8)
    M_pad = ((M + tm - 1) // tm) * tm
    patches_p = jnp.pad(patches.astype(jnp.bfloat16),
                        ((0, M_pad - M), (0, K_pad - K)))

    feats = backbone_project(patches_p, params['wb'], params['bb'], tm=tm)[:M]
    feats = feats.reshape(B, S_sp, C_FEAT)                                # NHWC flattened, bf16

    # per-image precompute: fused conv_att_1 projection + per-image projection mean
    fw1, cmean = context_precompute(feats, params['w_cat'])
    # Wrapper-side layout plumbing on a tiny (B,1,128) tensor: the context half (lanes
    # [64:128] of the fused projection mean) is repositioned into lanes [0:64] so kernel 3
    # can add it directly to the roi-mean; remaining lanes are zero.
    ctx = jnp.concatenate([cmean[:, :, ATT_HIDDEN:],
                           jnp.zeros_like(cmean[:, :, :ATT_HIDDEN])], axis=-1)

    # fused RoIPool(1,1) + regional attention -> attention-weighted descriptors (bf16)
    weighted = roi_pool_attention(feats, fw1, ctx, meta,
                                  params['b1'], params['w2'], params['b2'], Wf=Wf)

    # per-image mean over its R-MAC regions as a (B, N_pad) selection matrix
    sel = np.zeros((B, N_pad), dtype=np.float32)
    for b in range(B):
        sel[b, b * R_pad: b * R_pad + R_per] = 1.0 / R_per
    sel = jnp.asarray(sel, dtype=jnp.bfloat16)

    logits_pad = aggregate_and_fc(weighted, sel, params['wfc_t'], params['bfc'])
    return logits_pad[:, :NUM_CLASSES]


def init_params(key, c_in=3):
    ks = jax.random.split(key, 5)
    K = c_in * 64
    K_pad = ((K + 255) // 256) * 256
    wb = jnp.zeros((K_pad, C_FEAT), jnp.float32).at[:K].set(
        0.05 * jax.random.normal(ks[0], (K, C_FEAT), jnp.float32))
    bb = jnp.zeros((1, C_FEAT), jnp.float32)
    # conv_att_1: Conv1d(4096, 64, 1) split into region half (w1a) and context half (w1b),
    # fused column-wise into one lane-dense (2048, 128) weight: cols [:64]=w1a, [64:]=w1b.
    w1a = 0.02 * jax.random.normal(ks[1], (C_FEAT, ATT_HIDDEN), jnp.float32)
    w1b = 0.02 * jax.random.normal(ks[2], (C_FEAT, ATT_HIDDEN), jnp.float32)
    w_cat = jnp.concatenate([w1a, w1b], axis=1)                     # (2048, 128)
    b1 = jnp.zeros((1, ATT_PAD), jnp.float32)                       # bias zero-init (as module)
    # conv_att_2: Conv1d(64, 1, 1) stored as a (1, 128) row, zeros in padded lanes
    w2 = jnp.zeros((1, ATT_PAD), jnp.float32).at[:, :ATT_HIDDEN].set(
        0.02 * jax.random.normal(ks[3], (1, ATT_HIDDEN), jnp.float32))
    b2 = jnp.zeros((1, 1), jnp.float32)
    # fc: Linear(2048, 1000), zero-padded to 1024 classes for lane-dense MXU/store shapes
    wfc = jnp.zeros((C_FEAT, NCLS_PAD), jnp.float32).at[:, :NUM_CLASSES].set(
        0.02 * jax.random.normal(ks[4], (C_FEAT, NUM_CLASSES), jnp.float32))
    bfc = jnp.zeros((1, NCLS_PAD), jnp.float32)
    return dict(wb=wb.astype(jnp.bfloat16), bb=bb,
                w_cat=w_cat.astype(jnp.bfloat16),
                b1=b1, w2=w2, b2=b2,
                wfc_t=wfc.astype(jnp.bfloat16), bfc=bfc)


if __name__ == "__main__":
    key = jax.random.PRNGKey(0)
    pkey, xkey = jax.random.split(key)
    params = init_params(pkey, c_in=3)

    # Small input consistent with the module: NCHW images, 1/32 spatial scale
    # -> a 2x2x2048 feature map and 55 R-MAC regions per image.
    B, Cin, H, W = 2, 3, 64, 64
    x = jax.random.normal(xkey, (B, Cin, H, W), jnp.float32)

    out = net_forward(x, params)
    out = jax.block_until_ready(out)
    assert out.shape == (B, NUM_CLASSES)
    assert bool(jnp.all(jnp.isfinite(out)))
    print("KERNEL_OK")
</pallas_src>

<mosaic_0001>
module attributes {stable_mosaic.version = 11 : i64} {
  func.func @_backbone_kernel(%arg0: i32, %arg1: memref<8x256xbf16, #tpu.memory_space<vmem>>, %arg2: memref<256x2048xbf16, #tpu.memory_space<vmem>>, %arg3: memref<1x2048xf32, #tpu.memory_space<vmem>>, %arg4: memref<8x2048xbf16, #tpu.memory_space<vmem>>) attributes {dimension_semantics = [#tpu.dimension_semantics<parallel>], iteration_bounds = array<i64: 1>, scalar_prefetch = 0 : i64, scratch_operands = 0 : i64, tpu.core_type = #tpu.core_type<tc>, window_params = [{transform_indices = @transform_0, window_bounds = array<i64: 8, 256>}, {pipeline_mode = #tpu.pipeline_mode<synchronous>, transform_indices = @transform_1, window_bounds = array<i64: 256, 2048>}, {pipeline_mode = #tpu.pipeline_mode<synchronous>, transform_indices = @transform_2, window_bounds = array<i64: 1, 2048>}, {transform_indices = @transform_3, window_bounds = array<i64: 8, 2048>}]} {
    %c0 = arith.constant 0 : index
    %c0_0 = arith.constant 0 : index
    %0 = vector.load %arg1[%c0, %c0_0] : memref<8x256xbf16, #tpu.memory_space<vmem>>, vector<8x256xbf16>
    %c0_1 = arith.constant 0 : index
    %c0_2 = arith.constant 0 : index
    %1 = vector.load %arg2[%c0_1, %c0_2] : memref<256x2048xbf16, #tpu.memory_space<vmem>>, vector<256x2048xbf16>
    %cst = arith.constant dense<0.000000e+00> : vector<8x2048xf32>
    %2 = tpu.matmul %0, %1, %cst {dimension_numbers = #tpu.dot_dimension_numbers<[1], [0], [0], [1], [0, 0, 1, 1], [], []>} : vector<8x256xbf16>, vector<256x2048xbf16>, vector<8x2048xf32> -> vector<8x2048xf32>
    %c0_3 = arith.constant 0 : index
    %c0_4 = arith.constant 0 : index
    %3 = vector.load %arg3[%c0_3, %c0_4] : memref<1x2048xf32, #tpu.memory_space<vmem>>, vector<1x2048xf32>
    %4 = vector.broadcast %3 : vector<1x2048xf32> to vector<8x2048xf32>
    %5 = arith.addf %2, %4 : vector<8x2048xf32>
    %6 = arith.truncf %5 : vector<8x2048xf32> to vector<8x2048xbf16>
    %c0_5 = arith.constant 0 : index
    %c0_6 = arith.constant 0 : index
    %7 = vector.load %arg4[%c0_5, %c0_6] : memref<8x2048xbf16, #tpu.memory_space<vmem>>, vector<8x2048xbf16>
    tpu.vector_store %arg4[%c0_5, %c0_6], %6 {strides = array<i32>} : memref<8x2048xbf16, #tpu.memory_space<vmem>>, vector<8x2048xbf16>,
    return
  }
  func.func @transform_0(%arg0: i32) -> (i32, i32) {
    %c0_i32 = arith.constant 0 : i32
    %c0_i32_0 = arith.constant 0 : i32
    return %arg0, %c0_i32 : i32, i32
  }
  func.func @transform_1(%arg0: i32) -> (i32, i32) {
    %c0_i32 = arith.constant 0 : i32
    %c0_i32_0 = arith.constant 0 : i32
    %c0_i32_1 = arith.constant 0 : i32
    return %c0_i32, %c0_i32_0 : i32, i32
  }
  func.func @transform_2(%arg0: i32) -> (i32, i32) {
    %c0_i32 = arith.constant 0 : i32
    %c0_i32_0 = arith.constant 0 : i32
    %c0_i32_1 = arith.constant 0 : i32
    return %c0_i32, %c0_i32_0 : i32, i32
  }
  func.func @transform_3(%arg0: i32) -> (i32, i32) {
    %c0_i32 = arith.constant 0 : i32
    %c0_i32_0 = arith.constant 0 : i32
    return %arg0, %c0_i32 : i32, i32
  }
}

</mosaic_0001>

<bundles_post_ra>
// kernel: tpu_custom_call.1
= control target key start
LH: loop header
LB: loop body
LE: loop exit
PB: predicated region body
PF: predicated region fallthrough
CT: control target
= control target key end

     0   :  { %8 = vsyncpa [#allocation3], 0  ;;  %s2538_s0 = inlined_call_operand.hbm [shape: bf16[8,256], index: 0, kind: input, shape index: {}]   ;;  %s2539_s1 = inlined_call_operand.hbm [shape: bf16[256,2048], index: 1, kind: input, shape index: {}]   ;;  %s2540_s2 = inlined_call_operand.hbm [shape: f32[1,2048], index: 2, kind: input, shape index: {}]   ;;  %s2541_s3 = inlined_call_operand.hbm [shape: bf16[8,2048], index: 3, kind: output, shape index: {}]  }
   0x1   :  { %9 = vsyncpa [#allocation6], 0 }
   0x2   :  { %10 = vsyncpa [#allocation4], 0  ;;  %s2464_s12 = smov [#allocation5]  }
   0x3   :  { %s26_s13 = sshll.u32 %s2464_s12, 4  ;;  %s27_s13 = int_to_ptr.vmem [resolvable:$true] %s26_s13 }
   0x4   :  { %s2386_s14 = scalar_lea.vmem %s27_s13, 32768  ;;  %p2391_p1 = scmp.lt.s32.totalorder %s27_s13, %s27_s13 }
   0x5   :  { %p2387_p0 = scmp.ne.s32.totalorder %s27_s13, %s2386_s14  ;;  %p2392_p2 = scmp.lt.s32.totalorder %s2386_s14, %s2386_s14 }
   0x7   :  { %p2393_p3 = por %p2392_p2, %p2391_p1 }
   0x9   :  { %p2394_p4 = pnand %p2393_p3, %p2387_p0 }
   0xb   :  { %2397 = shalt.err (!%p2394_p4)
}
   0xc   :  { %s2465_s15 = smov 1024   ;;  %s2466_s16 = smov 64  }
   0xd   :  { %32 = dma.hbm_to_vmem [thread:$0]  %s2539_s1, 32768, %s27_s13, [#allocation6], %s2465_s15, %s2465_s15, %s2466_s16  }
   0xe   :  { %s2467_s19 = smov [#allocation2]   ;;  %s2468_s21 = smov [#allocation7]  }
   0xf   :  { %s17_s20 = sshll.u32 %s2467_s19, 4  ;;  %s39_s22 = sshll.u32 %s2468_s21, 4  ;;  %s18_s20 = int_to_ptr.vmem [resolvable:$true] %s17_s20  ;;  %s40_s22 = int_to_ptr.vmem [resolvable:$true] %s39_s22 }
  0x10   :  { %s2406_s23 = scalar_lea.vmem %s18_s20, 128  ;;  %p2411_p6 = scmp.lt.s32.totalorder %s18_s20, %s18_s20 }
  0x11   :  { %p2407_p5 = scmp.ne.s32.totalorder %s18_s20, %s2406_s23  ;;  %p2412_p7 = scmp.lt.s32.totalorder %s2406_s23, %s2406_s23 }
  0x13   :  { %p2413_p8 = por %p2412_p7, %p2411_p6 }
  0x15   :  { %p2414_p9 = pnand %p2413_p8, %p2407_p5 }
  0x17   :  { %2417 = shalt.err (!%p2414_p9)
}
  0x18   :  { %20 = dma.hbm_to_vmem [thread:$0]  %s2538_s0, 128, %s18_s20, [#allocation3]  }
  0x19   :  { %s2426_s26 = scalar_lea.vmem %s40_s22, 256  ;;  %p2431_p11 = scmp.lt.s32.totalorder %s40_s22, %s40_s22 }
  0x1a   :  { %p2427_p10 = scmp.ne.s32.totalorder %s40_s22, %s2426_s26  ;;  %p2432_p12 = scmp.lt.s32.totalorder %s2426_s26, %s2426_s26 }
  0x1c   :  { %p2433_p13 = por %p2432_p12, %p2431_p11 }
  0x1e   :  { %p2434_p0 = pnand %p2433_p13, %p2427_p10 }
  0x20   :  { %2437 = shalt.err (!%p2434_p0)
}
  0x21   :  { %42 = dma.hbm_to_vmem [thread:$0]  %s2540_s2, 256, %s40_s22, [#allocation6]  }
  0x22   :  { %2458 = dma.done.wait [#allocation3], 128  }
  0x23   :  { %2459 = vsyncadd [#allocation3], 4294967168 }
  0x24   :  { %2460 = dma.done.wait [#allocation6], 33024  }
  0x25   :  { %2461 = vsyncadd [#allocation6], 4294934272  ;;  %v165_v0 = vld [vmem:[#allocation5 + $0x380] sm:$0xff]  ;;  %v166_v2 = vld [vmem:[#allocation5 + $0x388] sm:$0xff]  ;;  %s2469_s0 = smov [#allocation8]  }
  0x26   :  { %v173_v1 = vld [vmem:[#allocation5 + $0x3c0] sm:$0xff]  ;;  %v174_v4 = vld [vmem:[#allocation5 + $0x3c8] sm:$0xff]  ;;  %v2499_v53 = vld [vmem:[#allocation2] sm:$0xff]  ;;  %s2086_s2 = sshll.u32 %s2469_s0, 4  ;;  %s2087_s2 = int_to_ptr.vmem [resolvable:$true] %s2086_s2 }
  0x27   :  { %v2211_v3 = vcombine.high %v165_v0, %v173_v1  ;;  %v2210_v5 = vcombine.low %v165_v0, %v173_v1  ;;  %v149_v6 = vld [vmem:[#allocation5 + $0x300] sm:$0xff]  ;;  %v2213_v8 = vcombine.high %v166_v2, %v174_v4  ;;  %v2212_v9 = vcombine.low %v166_v2, %v174_v4  ;;  %v150_v11 = vld [vmem:[#allocation5 + $0x308] sm:$0xff]  ;;  %s2438_s28 = scalar_lea.vmem %s2087_s2, 1024  ;;  %p2443_p2 = scmp.lt.s32.totalorder %s2087_s2, %s2087_s2 }
  0x28   :  { %v157_v7 = vld [vmem:[#allocation5 + $0x340] sm:$0xff]  ;;  %v158_v12 = vld [vmem:[#allocation5 + $0x348] sm:$0xff]  ;;  %v2503_v57 = vcombine.high %v2499_v53, %v2499_v53  ;;  %p2439_p1 = scmp.ne.s32.totalorder %s2087_s2, %s2438_s28  ;;  %p2444_p3 = scmp.lt.s32.totalorder %s2438_s28, %s2438_s28 }
  0x29   :  { %v2195_v10 = vcombine.high %v149_v6, %v157_v7  ;;  %v133_v13 = vld [vmem:[#allocation5 + $0x280] sm:$0xff]  ;;  %1680 = vmatprep.subr.bf16.mxu0 %v2211_v3  ;;  %v2197_v14 = vcombine.high %v150_v11, %v158_v12  ;;  %v134_v16 = vld [vmem:[#allocation5 + $0x288] sm:$0xff]  ;;  %1721 = vmatprep.subr.bf16.mxu1 %v2213_v8  ;;  %v2194_v18 = vcombine.low %v149_v6, %v157_v7 }
  0x2a   :  { %v141_v15 = vld [vmem:[#allocation5 + $0x2c0] sm:$0xff]  ;;  %v142_v17 = vld [vmem:[#allocation5 + $0x2c8] sm:$0xff]  ;;  %1681 = vmatpush1.bf16.msra.mxu0 %v2210_v5  ;;  %1722 = vmatpush1.bf16.msra.mxu1 %v2212_v9  ;;  %v2196_v19 = vcombine.low %v150_v11, %v158_v12  ;;  %p2445_p4 = por %p2444_p3, %p2443_p2 }
  0x2b   :  { %1682 = vmatprep.subr.bf16.mxu0 %v2195_v10  ;;  %v2179_v20 = vcombine.high %v133_v13, %v141_v15  ;;  %1723 = vmatprep.subr.bf16.mxu1 %v2197_v14  ;;  %v2181_v21 = vcombine.high %v134_v16, %v142_v17  ;;  %v117_v22 = vld [vmem:[#allocation5 + $0x200] sm:$0xff]  ;;  %v118_v24 = vld [vmem:[#allocation5 + $0x208] sm:$0xff]  ;;  %v2178_v26 = vcombine.low %v133_v13, %v141_v15 }
  0x2c   :  { %v125_v23 = vld [vmem:[#allocation5 + $0x240] sm:$0xff]  ;;  %v126_v25 = vld [vmem:[#allocation5 + $0x248] sm:$0xff]  ;;  %v2180_v27 = vcombine.low %v134_v16, %v142_v17  ;;  %1712 = vmatprep.mubr.bf16.mxu0 %v2503_v57  ;;  %1753 = vmatprep.mubr.bf16.mxu1 %v2503_v57  ;;  %p2446_p5 = pnand %p2445_p4, %p2439_p1 }
  0x2d   :  { %v2163_v28 = vcombine.high %v117_v22, %v125_v23  ;;  %v2165_v29 = vcombine.high %v118_v24, %v126_v25  ;;  %v101_v30 = vld [vmem:[#allocation5 + $0x180] sm:$0xff]  ;;  %v102_v32 = vld [vmem:[#allocation5 + $0x188] sm:$0xff]  ;;  %v2162_v34 = vcombine.low %v117_v22, %v125_v23  ;;  %v2164_v35 = vcombine.low %v118_v24, %v126_v25 }
  0x2e   :  { %1683 = vmatpush1.bf16.msra.mxu0 %v2194_v18  ;;  %1724 = vmatpush1.bf16.msra.mxu1 %v2196_v19  ;;  %v109_v31 = vld [vmem:[#allocation5 + $0x1c0] sm:$0xff]  ;;  %v110_v33 = vld [vmem:[#allocation5 + $0x1c8] sm:$0xff] }
  0x2f   :  { %1684 = vmatprep.subr.bf16.mxu0 %v2179_v20  ;;  %1725 = vmatprep.subr.bf16.mxu1 %v2181_v21  ;;  %v2147_v36 = vcombine.high %v101_v30, %v109_v31  ;;  %v2149_v37 = vcombine.high %v102_v32, %v110_v33  ;;  %v85_v38 = vld [vmem:[#allocation5 + $0x100] sm:$0xff]  ;;  %v86_v40 = vld [vmem:[#allocation5 + $0x108] sm:$0xff]  ;;  %v2146_v42 = vcombine.low %v101_v30, %v109_v31 }
  0x30   :  { %v93_v39 = vld [vmem:[#allocation5 + $0x140] sm:$0xff]  ;;  %v94_v41 = vld [vmem:[#allocation5 + $0x148] sm:$0xff]  ;;  %v2148_v43 = vcombine.low %v102_v32, %v110_v33 }
  0x31   :  { %v2131_v44 = vcombine.high %v85_v38, %v93_v39  ;;  %v2133_v45 = vcombine.high %v86_v40, %v94_v41  ;;  %v69_v46 = vld [vmem:[#allocation5 + $0x80] sm:$0xff]  ;;  %v70_v48 = vld [vmem:[#allocation5 + $0x88] sm:$0xff]  ;;  %v2130_v50 = vcombine.low %v85_v38, %v93_v39  ;;  %v2132_v51 = vcombine.low %v86_v40, %v94_v41 }
  0x32   :  { %1685 = vmatpush1.bf16.msra.mxu0 %v2178_v26  ;;  %1726 = vmatpush1.bf16.msra.mxu1 %v2180_v27  ;;  %v77_v47 = vld [vmem:[#allocation5 + $0xc0] sm:$0xff]  ;;  %v78_v49 = vld [vmem:[#allocation5 + $0xc8] sm:$0xff] }
  0x33   :  { %1686 = vmatprep.subr.bf16.mxu0 %v2163_v28  ;;  %1727 = vmatprep.subr.bf16.mxu1 %v2165_v29  ;;  %v2115_v52 = vcombine.high %v69_v46, %v77_v47  ;;  %v2117_v54 = vcombine.high %v70_v48, %v78_v49  ;;  %v53_v55 = vld [vmem:[#allocation5] sm:$0xff]  ;;  %v54_v58 = vld [vmem:[#allocation5 + $0x8] sm:$0xff]  ;;  %v2114_v60 = vcombine.low %v69_v46, %v77_v47 }
  0x34   :  { %v61_v56 = vld [vmem:[#allocation5 + $0x40] sm:$0xff]  ;;  %v62_v59 = vld [vmem:[#allocation5 + $0x48] sm:$0xff]  ;;  %v2116_v61 = vcombine.low %v70_v48, %v78_v49 }
  0x35   :  { %v2099_v62 = vcombine.high %v53_v55, %v61_v56  ;;  %v2101_v63 = vcombine.high %v54_v58, %v62_v59  ;;  %v293_v0 = vld [vmem:[#allocation5 + $0x780] sm:$0xff]  ;;  %v294_v2 = vld [vmem:[#allocation5 + $0x788] sm:$0xff]  ;;  %v2098_v4 = vcombine.low %v53_v55, %v61_v56  ;;  %v2100_v5 = vcombine.low %v54_v58, %v62_v59 }
  0x36   :  { %1687 = vmatpush1.bf16.msra.mxu0 %v2162_v34  ;;  %1728 = vmatpush1.bf16.msra.mxu1 %v2164_v35  ;;  %v301_v1 = vld [vmem:[#allocation5 + $0x7c0] sm:$0xff]  ;;  %v302_v3 = vld [vmem:[#allocation5 + $0x7c8] sm:$0xff] }
  0x37   :  { %1688 = vmatprep.subr.bf16.mxu0 %v2147_v36  ;;  %1729 = vmatprep.subr.bf16.mxu1 %v2149_v37  ;;  %v2339_v6 = vcombine.high %v293_v0, %v301_v1  ;;  %v2341_v7 = vcombine.high %v294_v2, %v302_v3  ;;  %v277_v8 = vld [vmem:[#allocation5 + $0x700] sm:$0xff]  ;;  %v278_v10 = vld [vmem:[#allocation5 + $0x708] sm:$0xff]  ;;  %v2338_v12 = vcombine.low %v293_v0, %v301_v1 }
  0x38   :  { %v285_v9 = vld [vmem:[#allocation5 + $0x740] sm:$0xff]  ;;  %v286_v11 = vld [vmem:[#allocation5 + $0x748] sm:$0xff]  ;;  %v2340_v13 = vcombine.low %v294_v2, %v302_v3  ;;  %v167_v2 = vld [vmem:[#allocation5 + $0x390] sm:$0xff] }
  0x39   :  { %v2323_v14 = vcombine.high %v277_v8, %v285_v9  ;;  %v2325_v15 = vcombine.high %v278_v10, %v286_v11  ;;  %v261_v16 = vld [vmem:[#allocation5 + $0x680] sm:$0xff]  ;;  %v262_v18 = vld [vmem:[#allocation5 + $0x688] sm:$0xff]  ;;  %v2322_v20 = vcombine.low %v277_v8, %v285_v9  ;;  %v2324_v21 = vcombine.low %v278_v10, %v286_v11  ;;  %v175_v3 = vld [vmem:[#allocation5 + $0x3d0] sm:$0xff] }
  0x3a   :  { %1689 = vmatpush1.bf16.msra.mxu0 %v2146_v42  ;;  %1730 = vmatpush1.bf16.msra.mxu1 %v2148_v43  ;;  %v269_v17 = vld [vmem:[#allocation5 + $0x6c0] sm:$0xff]  ;;  %v270_v19 = vld [vmem:[#allocation5 + $0x6c8] sm:$0xff]  ;;  %v2215_v8 = vcombine.high %v167_v2, %v175_v3  ;;  %v151_v10 = vld [vmem:[#allocation5 + $0x310] sm:$0xff] }
  0x3b   :  { %1690 = vmatprep.subr.bf16.mxu0 %v2131_v44  ;;  %1731 = vmatprep.subr.bf16.mxu1 %v2133_v45  ;;  %v2307_v22 = vcombine.high %v261_v16, %v269_v17  ;;  %v2309_v23 = vcombine.high %v262_v18, %v270_v19  ;;  %v245_v24 = vld [vmem:[#allocation5 + $0x600] sm:$0xff]  ;;  %v246_v26 = vld [vmem:[#allocation5 + $0x608] sm:$0xff]  ;;  %v2306_v28 = vcombine.low %v261_v16, %v269_v17  ;;  %v159_v11 = vld [vmem:[#allocation5 + $0x350] sm:$0xff] }
  0x3c   :  { %v253_v25 = vld [vmem:[#allocation5 + $0x640] sm:$0xff]  ;;  %v254_v27 = vld [vmem:[#allocation5 + $0x648] sm:$0xff]  ;;  %v2308_v29 = vcombine.low %v262_v18, %v270_v19  ;;  %v2199_v17 = vcombine.high %v151_v10, %v159_v11  ;;  %v135_v19 = vld [vmem:[#allocation5 + $0x290] sm:$0xff] }
  0x3d   :  { %v2291_v30 = vcombine.high %v245_v24, %v253_v25  ;;  %v2293_v31 = vcombine.high %v246_v26, %v254_v27  ;;  %v229_v32 = vld [vmem:[#allocation5 + $0x580] sm:$0xff]  ;;  %v230_v34 = vld [vmem:[#allocation5 + $0x588] sm:$0xff]  ;;  %v2290_v36 = vcombine.low %v245_v24, %v253_v25  ;;  %v2292_v37 = vcombine.low %v246_v26, %v254_v27  ;;  %v119_v26 = vld [vmem:[#allocation5 + $0x210] sm:$0xff] }
  0x3e   :  { %1691 = vmatpush1.bf16.msra.mxu0 %v2130_v50  ;;  %1732 = vmatpush1.bf16.msra.mxu1 %v2132_v51  ;;  %v237_v33 = vld [vmem:[#allocation5 + $0x5c0] sm:$0xff]  ;;  %v238_v35 = vld [vmem:[#allocation5 + $0x5c8] sm:$0xff]  ;;  %v127_v27 = vld [vmem:[#allocation5 + $0x250] sm:$0xff] }
  0x3f   :  { %1692 = vmatprep.subr.bf16.mxu0 %v2115_v52  ;;  %1733 = vmatprep.subr.bf16.mxu1 %v2117_v54  ;;  %v2275_v38 = vcombine.high %v229_v32, %v237_v33  ;;  %v2277_v39 = vcombine.high %v230_v34, %v238_v35  ;;  %v213_v40 = vld [vmem:[#allocation5 + $0x500] sm:$0xff]  ;;  %v214_v42 = vld [vmem:[#allocation5 + $0x508] sm:$0xff]  ;;  %v2274_v44 = vcombine.low %v229_v32, %v237_v33 }
  0x40   :  { %v221_v41 = vld [vmem:[#allocation5 + $0x540] sm:$0xff]  ;;  %v222_v43 = vld [vmem:[#allocation5 + $0x548] sm:$0xff]  ;;  %v2276_v45 = vcombine.low %v230_v34, %v238_v35  ;;  %v2167_v32 = vcombine.high %v119_v26, %v127_v27  ;;  %v103_v34 = vld [vmem:[#allocation5 + $0x190] sm:$0xff] }
  0x41   :  { %v2259_v46 = vcombine.high %v213_v40, %v221_v41  ;;  %v2261_v47 = vcombine.high %v214_v42, %v222_v43  ;;  %v197_v48 = vld [vmem:[#allocation5 + $0x480] sm:$0xff]  ;;  %v198_v50 = vld [vmem:[#allocation5 + $0x488] sm:$0xff]  ;;  %v2258_v52 = vcombine.low %v213_v40, %v221_v41  ;;  %v2260_v54 = vcombine.low %v214_v42, %v222_v43  ;;  %v111_v35 = vld [vmem:[#allocation5 + $0x1d0] sm:$0xff] }
  0x42   :  { %1693 = vmatpush1.bf16.msra.mxu0 %v2114_v60  ;;  %1734 = vmatpush1.bf16.msra.mxu1 %v2116_v61  ;;  %v205_v49 = vld [vmem:[#allocation5 + $0x4c0] sm:$0xff]  ;;  %v206_v51 = vld [vmem:[#allocation5 + $0x4c8] sm:$0xff]  ;;  %v2151_v40 = vcombine.high %v103_v34, %v111_v35  ;;  %v87_v42 = vld [vmem:[#allocation5 + $0x110] sm:$0xff] }
  0x43   :  { %1694 = vmatprep.subr.bf16.mxu0 %v2099_v62  ;;  %1735 = vmatprep.subr.bf16.mxu1 %v2101_v63  ;;  %v2243_v55 = vcombine.high %v197_v48, %v205_v49  ;;  %v2245_v56 = vcombine.high %v198_v50, %v206_v51  ;;  %v181_v58 = vld [vmem:[#allocation5 + $0x400] sm:$0xff]  ;;  %v182_v60 = vld [vmem:[#allocation5 + $0x408] sm:$0xff]  ;;  %v2242_v62 = vcombine.low %v197_v48, %v205_v49  ;;  %v95_v43 = vld [vmem:[#allocation5 + $0x150] sm:$0xff] }
  0x44   :  { %v189_v59 = vld [vmem:[#allocation5 + $0x440] sm:$0xff]  ;;  %v190_v61 = vld [vmem:[#allocation5 + $0x448] sm:$0xff]  ;;  %v2244_v63 = vcombine.low %v198_v50, %v206_v51  ;;  %v2135_v48 = vcombine.high %v87_v42, %v95_v43  ;;  %v71_v50 = vld [vmem:[#allocation5 + $0x90] sm:$0xff] }
  0x45   :  { %v2227_v0 = vcombine.high %v181_v58, %v189_v59  ;;  %v2229_v1 = vcombine.high %v182_v60, %v190_v61  ;;  %v79_v51 = vld [vmem:[#allocation5 + $0xd0] sm:$0xff] }
  0x46   :  { %1695 = vmatpush1.bf16.msra.mxu0 %v2098_v4  ;;  %1736 = vmatpush1.bf16.msra.mxu1 %v2100_v5  ;;  %v168_v4 = vld [vmem:[#allocation5 + $0x398] sm:$0xff] }
  0x47   :  { %1696 = vmatprep.subr.bf16.mxu0 %v2339_v6  ;;  %1737 = vmatprep.subr.bf16.mxu1 %v2341_v7  ;;  %v176_v5 = vld [vmem:[#allocation5 + $0x3d8] sm:$0xff]  ;;  %v2226_v6 = vcombine.low %v181_v58, %v189_v59  ;;  %v2228_v7 = vcombine.low %v182_v60, %v190_v61  ;;  %v2119_v58 = vcombine.high %v71_v50, %v79_v51  ;;  %v55_v60 = vld [vmem:[#allocation5 + $0x10] sm:$0xff] }
  0x48   :  { %v2217_v9 = vcombine.high %v168_v4, %v176_v5  ;;  %v2216_v16 = vcombine.low %v168_v4, %v176_v5  ;;  %v63_v61 = vld [vmem:[#allocation5 + $0x50] sm:$0xff] }
  0x49   :  { %v295_v4 = vld [vmem:[#allocation5 + $0x790] sm:$0xff] }
  0x4a   :  { %1697 = vmatpush2.bf16.msra.mxu0 %v2338_v12  ;;  %1738 = vmatpush2.bf16.msra.mxu1 %v2340_v13  ;;  %v2509_v12 = vcombine.low %v2499_v53, %v2499_v53  ;;  %v152_v13 = vld [vmem:[#allocation5 + $0x318] sm:$0xff]  ;;  %v2198_v53 = vcombine.low %v151_v10, %v159_v11  ;;  %v303_v5 = vld [vmem:[#allocation5 + $0x7d0] sm:$0xff] }
  0x4b   :  { %1698 = vmatprep.subr.bf16.mxu0 %v2323_v14  ;;  %1739 = vmatprep.subr.bf16.mxu1 %v2325_v15  ;;  %v160_v14 = vld [vmem:[#allocation5 + $0x358] sm:$0xff]  ;;  %v2214_v15 = vcombine.low %v167_v2, %v175_v3  ;;  %v2103_v2 = vcombine.high %v55_v60, %v63_v61  ;;  %v2343_v10 = vcombine.high %v295_v4, %v303_v5 }
  0x4c   :  { %v2201_v18 = vcombine.high %v152_v13, %v160_v14 }
  0x4e   :  { %1699 = vmatpush2.bf16.msra.mxu0 %v2322_v20  ;;  %1740 = vmatpush2.bf16.msra.mxu1 %v2324_v21  ;;  %v143_v20 = vld [vmem:[#allocation5 + $0x2d0] sm:$0xff]  ;;  %v136_v21 = vld [vmem:[#allocation5 + $0x298] sm:$0xff] }
  0x4f   :  { %1700 = vmatprep.subr.bf16.mxu0 %v2307_v22  ;;  %1741 = vmatprep.subr.bf16.mxu1 %v2309_v23  ;;  %v144_v22 = vld [vmem:[#allocation5 + $0x2d8] sm:$0xff]  ;;  %v2200_v23 = vcombine.low %v152_v13, %v160_v14  ;;  %v2183_v24 = vcombine.high %v135_v19, %v143_v20  ;;  %v279_v13 = vld [vmem:[#allocation5 + $0x710] sm:$0xff] }
  0x50   :  { %v2185_v25 = vcombine.high %v136_v21, %v144_v22  ;;  %v287_v14 = vld [vmem:[#allocation5 + $0x750] sm:$0xff] }
  0x52   :  { %1701 = vmatpush2.bf16.msra.mxu0 %v2306_v28  ;;  %1742 = vmatpush2.bf16.msra.mxu1 %v2308_v29  ;;  %v120_v28 = vld [vmem:[#allocation5 + $0x218] sm:$0xff] }
  0x53   :  { %1702 = vmatprep.subr.bf16.mxu0 %v2291_v30  ;;  %1743 = vmatprep.subr.bf16.mxu1 %v2293_v31  ;;  %v128_v29 = vld [vmem:[#allocation5 + $0x258] sm:$0xff]  ;;  %v2182_v30 = vcombine.low %v135_v19, %v143_v20  ;;  %v2184_v31 = vcombine.low %v136_v21, %v144_v22  ;;  %v2327_v19 = vcombine.high %v279_v13, %v287_v14  ;;  %v263_v21 = vld [vmem:[#allocation5 + $0x690] sm:$0xff] }
  0x54   :  { %v2169_v33 = vcombine.high %v120_v28, %v128_v29  ;;  %v271_v22 = vld [vmem:[#allocation5 + $0x6d0] sm:$0xff] }
  0x56   :  { %1703 = vmatpush2.bf16.msra.mxu0 %v2290_v36  ;;  %1744 = vmatpush2.bf16.msra.mxu1 %v2292_v37  ;;  %v104_v36 = vld [vmem:[#allocation5 + $0x198] sm:$0xff] }
  0x57   :  { %1704 = vmatprep.subr.bf16.mxu0 %v2275_v38  ;;  %1745 = vmatprep.subr.bf16.mxu1 %v2277_v39  ;;  %v112_v37 = vld [vmem:[#allocation5 + $0x1d8] sm:$0xff]  ;;  %v2166_v38 = vcombine.low %v119_v26, %v127_v27  ;;  %v2168_v39 = vcombine.low %v120_v28, %v128_v29  ;;  %v2311_v26 = vcombine.high %v263_v21, %v271_v22  ;;  %v247_v28 = vld [vmem:[#allocation5 + $0x610] sm:$0xff] }
  0x58   :  { %v2153_v41 = vcombine.high %v104_v36, %v112_v37  ;;  %v255_v29 = vld [vmem:[#allocation5 + $0x650] sm:$0xff] }
  0x5a   :  { %1705 = vmatpush2.bf16.msra.mxu0 %v2274_v44  ;;  %1746 = vmatpush2.bf16.msra.mxu1 %v2276_v45  ;;  %v88_v44 = vld [vmem:[#allocation5 + $0x118] sm:$0xff] }
  0x5b   :  { %1706 = vmatprep.subr.bf16.mxu0 %v2259_v46  ;;  %1747 = vmatprep.subr.bf16.mxu1 %v2261_v47  ;;  %v96_v45 = vld [vmem:[#allocation5 + $0x158] sm:$0xff]  ;;  %v2150_v46 = vcombine.low %v103_v34, %v111_v35  ;;  %v2152_v47 = vcombine.low %v104_v36, %v112_v37  ;;  %v2295_v34 = vcombine.high %v247_v28, %v255_v29  ;;  %v231_v36 = vld [vmem:[#allocation5 + $0x590] sm:$0xff] }
  0x5c   :  { %v2137_v49 = vcombine.high %v88_v44, %v96_v45  ;;  %v239_v37 = vld [vmem:[#allocation5 + $0x5d0] sm:$0xff] }
  0x5e   :  { %1707 = vmatpush2.bf16.msra.mxu0 %v2258_v52  ;;  %1748 = vmatpush2.bf16.msra.mxu1 %v2260_v54  ;;  %v72_v52 = vld [vmem:[#allocation5 + $0x98] sm:$0xff] }
  0x5f   :  { %1708 = vmatprep.subr.bf16.mxu0 %v2243_v55  ;;  %1749 = vmatprep.subr.bf16.mxu1 %v2245_v56  ;;  %v80_v54 = vld [vmem:[#allocation5 + $0xd8] sm:$0xff]  ;;  %v2134_v55 = vcombine.low %v87_v42, %v95_v43  ;;  %v2136_v56 = vcombine.low %v88_v44, %v96_v45  ;;  %v2279_v42 = vcombine.high %v231_v36, %v239_v37  ;;  %v215_v44 = vld [vmem:[#allocation5 + $0x510] sm:$0xff] }
  0x60   :  { %v2121_v59 = vcombine.high %v72_v52, %v80_v54  ;;  %v223_v45 = vld [vmem:[#allocation5 + $0x550] sm:$0xff] }
  0x62   :  { %1709 = vmatpush2.bf16.msra.mxu0 %v2242_v62  ;;  %1750 = vmatpush2.bf16.msra.mxu1 %v2244_v63  ;;  %v56_v62 = vld [vmem:[#allocation5 + $0x18] sm:$0xff] }
  0x63   :  { %1710 = vmatprep.subr.bf16.mxu0 %v2227_v0  ;;  %1751 = vmatprep.subr.bf16.mxu1 %v2229_v1  ;;  %v64_v63 = vld [vmem:[#allocation5 + $0x58] sm:$0xff]  ;;  %v2118_v0 = vcombine.low %v71_v50, %v79_v51  ;;  %v2120_v1 = vcombine.low %v72_v52, %v80_v54  ;;  %v2263_v50 = vcombine.high %v215_v44, %v223_v45  ;;  %v199_v52 = vld [vmem:[#allocation5 + $0x490] sm:$0xff] }
  0x64   :  { %v2105_v3 = vcombine.high %v56_v62, %v64_v63  ;;  %v207_v54 = vld [vmem:[#allocation5 + $0x4d0] sm:$0xff] }
  0x66   :  { %1711 = vmatpush2.bf16.msra.mxu0 %v2226_v6  ;;  %1752 = vmatpush2.bf16.msra.mxu1 %v2228_v7  ;;  %v296_v6 = vld [vmem:[#allocation5 + $0x798] sm:$0xff] }
  0x67   :  { %1762 = vmatprep.subr.bf16.mxu0 %v2215_v8  ;;  %1803 = vmatprep.subr.bf16.mxu1 %v2217_v9  ;;  %v304_v7 = vld [vmem:[#allocation5 + $0x7d8] sm:$0xff]  ;;  %v2102_v8 = vcombine.low %v55_v60, %v63_v61  ;;  %v2104_v9 = vcombine.low %v56_v62, %v64_v63  ;;  %v2247_v60 = vcombine.high %v199_v52, %v207_v54  ;;  %v183_v62 = vld [vmem:[#allocation5 + $0x410] sm:$0xff] }
  0x68   :  { %v2345_v11 = vcombine.high %v296_v6, %v304_v7  ;;  %v191_v63 = vld [vmem:[#allocation5 + $0x450] sm:$0xff] }
  0x69   :  { %1713 = vmatmul.mubr.bf16.vlgmr.msra.gmra.mxu0 %v2509_v12  ;;  %1754 = vmatmul.mubr.bf16.vlgmr.msra.gmra.mxu1 %v2509_v12 }
  0x6a   :  { %1763 = vmatpush1.bf16.msra.mxu0 %v2214_v15  ;;  %1804 = vmatpush1.bf16.msra.mxu1 %v2216_v16  ;;  %v280_v15 = vld [vmem:[#allocation5 + $0x718] sm:$0xff] }
  0x6b   :  { %1764 = vmatprep.subr.bf16.mxu0 %v2199_v17  ;;  %1805 = vmatprep.subr.bf16.mxu1 %v2201_v18  ;;  %v288_v16 = vld [vmem:[#allocation5 + $0x758] sm:$0xff]  ;;  %v2342_v17 = vcombine.low %v295_v4, %v303_v5  ;;  %v2344_v18 = vcombine.low %v296_v6, %v304_v7  ;;  %v2231_v4 = vcombine.high %v183_v62, %v191_v63  ;;  %v169_v6 = vld [vmem:[#allocation5 + $0x3a0] sm:$0xff] }
  0x6c   :  { %1794 = vmatprep.mubr.bf16.mxu0 %v2503_v57  ;;  %1835 = vmatprep.mubr.bf16.mxu1 %v2503_v57  ;;  %v2329_v20 = vcombine.high %v280_v15, %v288_v16  ;;  %v177_v7 = vld [vmem:[#allocation5 + $0x3e0] sm:$0xff] }
  0x6e   :  { %1765 = vmatpush1.bf16.msra.mxu0 %v2198_v53  ;;  %1806 = vmatpush1.bf16.msra.mxu1 %v2200_v23  ;;  %v264_v53 = vld [vmem:[#allocation5 + $0x698] sm:$0xff] }
  0x6f   :  { %1766 = vmatprep.subr.bf16.mxu0 %v2183_v24  ;;  %1807 = vmatprep.subr.bf16.mxu1 %v2185_v25  ;;  %v272_v23 = vld [vmem:[#allocation5 + $0x6d8] sm:$0xff]  ;;  %v2326_v24 = vcombine.low %v279_v13, %v287_v14  ;;  %v2328_v25 = vcombine.low %v280_v15, %v288_v16  ;;  %v2219_v13 = vcombine.high %v169_v6, %v177_v7  ;;  %v153_v15 = vld [vmem:[#allocation5 + $0x320] sm:$0xff] }
  0x70   :  { %v2313_v27 = vcombine.high %v264_v53, %v272_v23  ;;  %v161_v16 = vld [vmem:[#allocation5 + $0x360] sm:$0xff] }
  0x72   :  { %1767 = vmatpush1.bf16.msra.mxu0 %v2182_v30  ;;  %1808 = vmatpush1.bf16.msra.mxu1 %v2184_v31  ;;  %v248_v30 = vld [vmem:[#allocation5 + $0x618] sm:$0xff] }
  0x73   :  { %1768 = vmatprep.subr.bf16.mxu0 %v2167_v32  ;;  %1809 = vmatprep.subr.bf16.mxu1 %v2169_v33  ;;  %v256_v31 = vld [vmem:[#allocation5 + $0x658] sm:$0xff]  ;;  %v2310_v32 = vcombine.low %v263_v21, %v271_v22  ;;  %v2312_v33 = vcombine.low %v264_v53, %v272_v23  ;;  %v2203_v21 = vcombine.high %v153_v15, %v161_v16  ;;  %v137_v53 = vld [vmem:[#allocation5 + $0x2a0] sm:$0xff] }
  0x74   :  { %v2297_v35 = vcombine.high %v248_v30, %v256_v31  ;;  %v145_v23 = vld [vmem:[#allocation5 + $0x2e0] sm:$0xff] }
  0x76   :  { %1769 = vmatpush1.bf16.msra.mxu0 %v2166_v38  ;;  %1810 = vmatpush1.bf16.msra.mxu1 %v2168_v39  ;;  %v232_v38 = vld [vmem:[#allocation5 + $0x598] sm:$0xff] }
  0x77   :  { %1770 = vmatprep.subr.bf16.mxu0 %v2151_v40  ;;  %1811 = vmatprep.subr.bf16.mxu1 %v2153_v41  ;;  %v240_v39 = vld [vmem:[#allocation5 + $0x5d8] sm:$0xff]  ;;  %v2294_v40 = vcombine.low %v247_v28, %v255_v29  ;;  %v2296_v41 = vcombine.low %v248_v30, %v256_v31  ;;  %v2187_v28 = vcombine.high %v137_v53, %v145_v23  ;;  %v121_v30 = vld [vmem:[#allocation5 + $0x220] sm:$0xff] }
  0x78   :  { %v2281_v43 = vcombine.high %v232_v38, %v240_v39  ;;  %v129_v31 = vld [vmem:[#allocation5 + $0x260] sm:$0xff] }
  0x7a   :  { %1771 = vmatpush1.bf16.msra.mxu0 %v2150_v46  ;;  %1812 = vmatpush1.bf16.msra.mxu1 %v2152_v47  ;;  %v216_v46 = vld [vmem:[#allocation5 + $0x518] sm:$0xff] }
  0x7b   :  { %1772 = vmatprep.subr.bf16.mxu0 %v2135_v48  ;;  %1813 = vmatprep.subr.bf16.mxu1 %v2137_v49  ;;  %v224_v47 = vld [vmem:[#allocation5 + $0x558] sm:$0xff]  ;;  %v2278_v48 = vcombine.low %v231_v36, %v239_v37  ;;  %v2280_v49 = vcombine.low %v232_v38, %v240_v39  ;;  %v2171_v36 = vcombine.high %v121_v30, %v129_v31  ;;  %v105_v38 = vld [vmem:[#allocation5 + $0x1a0] sm:$0xff] }
  0x7c   :  { %v2265_v51 = vcombine.high %v216_v46, %v224_v47  ;;  %v113_v39 = vld [vmem:[#allocation5 + $0x1e0] sm:$0xff] }
  0x7e   :  { %1773 = vmatpush1.bf16.msra.mxu0 %v2134_v55  ;;  %1814 = vmatpush1.bf16.msra.mxu1 %v2136_v56  ;;  %v200_v55 = vld [vmem:[#allocation5 + $0x498] sm:$0xff] }
  0x7f   :  { %1774 = vmatprep.subr.bf16.mxu0 %v2119_v58  ;;  %1815 = vmatprep.subr.bf16.mxu1 %v2121_v59  ;;  %v208_v56 = vld [vmem:[#allocation5 + $0x4d8] sm:$0xff]  ;;  %v2262_v58 = vcombine.low %v215_v44, %v223_v45  ;;  %v2264_v59 = vcombine.low %v216_v46, %v224_v47  ;;  %v2155_v44 = vcombine.high %v105_v38, %v113_v39  ;;  %v89_v46 = vld [vmem:[#allocation5 + $0x120] sm:$0xff] }
  0x80   :  { %v2249_v61 = vcombine.high %v200_v55, %v208_v56  ;;  %v97_v47 = vld [vmem:[#allocation5 + $0x160] sm:$0xff] }
  0x82   :  { %1775 = vmatpush1.bf16.msra.mxu0 %v2118_v0  ;;  %1816 = vmatpush1.bf16.msra.mxu1 %v2120_v1  ;;  %v184_v0 = vld [vmem:[#allocation5 + $0x418] sm:$0xff] }
  0x83   :  { %1776 = vmatprep.subr.bf16.mxu0 %v2103_v2  ;;  %1817 = vmatprep.subr.bf16.mxu1 %v2105_v3  ;;  %v192_v1 = vld [vmem:[#allocation5 + $0x458] sm:$0xff]  ;;  %v2246_v2 = vcombine.low %v199_v52, %v207_v54  ;;  %v2248_v3 = vcombine.low %v200_v55, %v208_v56  ;;  %v2139_v52 = vcombine.high %v89_v46, %v97_v47  ;;  %v73_v55 = vld [vmem:[#allocation5 + $0xa0] sm:$0xff] }
  0x84   :  { %v2233_v5 = vcombine.high %v184_v0, %v192_v1  ;;  %v81_v56 = vld [vmem:[#allocation5 + $0xe0] sm:$0xff] }
  0x86   :  { %1777 = vmatpush1.bf16.msra.mxu0 %v2102_v8  ;;  %1818 = vmatpush1.bf16.msra.mxu1 %v2104_v9  ;;  %v170_v8 = vld [vmem:[#allocation5 + $0x3a8] sm:$0xff] }
  0x87   :  { %1778 = vmatprep.subr.bf16.mxu0 %v2343_v10  ;;  %1819 = vmatprep.subr.bf16.mxu1 %v2345_v11  ;;  %v178_v9 = vld [vmem:[#allocation5 + $0x3e8] sm:$0xff]  ;;  %v2230_v10 = vcombine.low %v183_v62, %v191_v63  ;;  %v2232_v11 = vcombine.low %v184_v0, %v192_v1  ;;  %v2123_v62 = vcombine.high %v73_v55, %v81_v56  ;;  %v57_v0 = vld [vmem:[#allocation5 + $0x20] sm:$0xff] }
  0x88   :  { %v2221_v14 = vcombine.high %v170_v8, %v178_v9  ;;  %v65_v1 = vld [vmem:[#allocation5 + $0x60] sm:$0xff] }
  0x8a   :  { %1779 = vmatpush2.bf16.msra.mxu0 %v2342_v17  ;;  %1820 = vmatpush2.bf16.msra.mxu1 %v2344_v18  ;;  %v154_v17 = vld [vmem:[#allocation5 + $0x328] sm:$0xff] }
  0x8b   :  { %1780 = vmatprep.subr.bf16.mxu0 %v2327_v19  ;;  %1821 = vmatprep.subr.bf16.mxu1 %v2329_v20  ;;  %v162_v18 = vld [vmem:[#allocation5 + $0x368] sm:$0xff]  ;;  %v2218_v19 = vcombine.low %v169_v6, %v177_v7  ;;  %v2220_v20 = vcombine.low %v170_v8, %v178_v9  ;;  %v2107_v6 = vcombine.high %v57_v0, %v65_v1  ;;  %v297_v8 = vld [vmem:[#allocation5 + $0x7a0] sm:$0xff] }
  0x8c   :  { %v2205_v22 = vcombine.high %v154_v17, %v162_v18  ;;  %v305_v9 = vld [vmem:[#allocation5 + $0x7e0] sm:$0xff] }
  0x8e   :  { %1781 = vmatpush2.bf16.msra.mxu0 %v2326_v24  ;;  %1822 = vmatpush2.bf16.msra.mxu1 %v2328_v25  ;;  %v138_v24 = vld [vmem:[#allocation5 + $0x2a8] sm:$0xff] }
  0x8f   :  { %1782 = vmatprep.subr.bf16.mxu0 %v2311_v26  ;;  %1823 = vmatprep.subr.bf16.mxu1 %v2313_v27  ;;  %v146_v25 = vld [vmem:[#allocation5 + $0x2e8] sm:$0xff]  ;;  %v2202_v26 = vcombine.low %v153_v15, %v161_v16  ;;  %v2204_v27 = vcombine.low %v154_v17, %v162_v18  ;;  %v2347_v15 = vcombine.high %v297_v8, %v305_v9  ;;  %v281_v17 = vld [vmem:[#allocation5 + $0x720] sm:$0xff] }
  0x90   :  { %v2189_v29 = vcombine.high %v138_v24, %v146_v25  ;;  %v289_v18 = vld [vmem:[#allocation5 + $0x760] sm:$0xff] }
  0x92   :  { %1783 = vmatpush2.bf16.msra.mxu0 %v2310_v32  ;;  %1824 = vmatpush2.bf16.msra.mxu1 %v2312_v33  ;;  %v122_v32 = vld [vmem:[#allocation5 + $0x228] sm:$0xff] }
  0x93   :  { %1784 = vmatprep.subr.bf16.mxu0 %v2295_v34  ;;  %1825 = vmatprep.subr.bf16.mxu1 %v2297_v35  ;;  %v130_v33 = vld [vmem:[#allocation5 + $0x268] sm:$0xff]  ;;  %v2186_v34 = vcombine.low %v137_v53, %v145_v23  ;;  %v2188_v35 = vcombine.low %v138_v24, %v146_v25  ;;  %v2331_v53 = vcombine.high %v281_v17, %v289_v18  ;;  %v265_v24 = vld [vmem:[#allocation5 + $0x6a0] sm:$0xff] }
  0x94   :  { %v2173_v37 = vcombine.high %v122_v32, %v130_v33  ;;  %v273_v25 = vld [vmem:[#allocation5 + $0x6e0] sm:$0xff] }
  0x96   :  { %1785 = vmatpush2.bf16.msra.mxu0 %v2294_v40  ;;  %1826 = vmatpush2.bf16.msra.mxu1 %v2296_v41  ;;  %v106_v40 = vld [vmem:[#allocation5 + $0x1a8] sm:$0xff] }
  0x97   :  { %1786 = vmatprep.subr.bf16.mxu0 %v2279_v42  ;;  %1827 = vmatprep.subr.bf16.mxu1 %v2281_v43  ;;  %v114_v41 = vld [vmem:[#allocation5 + $0x1e8] sm:$0xff]  ;;  %v2170_v42 = vcombine.low %v121_v30, %v129_v31  ;;  %v2172_v43 = vcombine.low %v122_v32, %v130_v33  ;;  %v2315_v30 = vcombine.high %v265_v24, %v273_v25  ;;  %v249_v32 = vld [vmem:[#allocation5 + $0x620] sm:$0xff] }
  0x98   :  { %v2157_v45 = vcombine.high %v106_v40, %v114_v41  ;;  %v257_v33 = vld [vmem:[#allocation5 + $0x660] sm:$0xff] }
  0x9a   :  { %1787 = vmatpush2.bf16.msra.mxu0 %v2278_v48  ;;  %1828 = vmatpush2.bf16.msra.mxu1 %v2280_v49  ;;  %v90_v48 = vld [vmem:[#allocation5 + $0x128] sm:$0xff] }
  0x9b   :  { %1788 = vmatprep.subr.bf16.mxu0 %v2263_v50  ;;  %1829 = vmatprep.subr.bf16.mxu1 %v2265_v51  ;;  %v98_v49 = vld [vmem:[#allocation5 + $0x168] sm:$0xff]  ;;  %v2154_v50 = vcombine.low %v105_v38, %v113_v39  ;;  %v2156_v51 = vcombine.low %v106_v40, %v114_v41  ;;  %v2299_v38 = vcombine.high %v249_v32, %v257_v33  ;;  %v233_v40 = vld [vmem:[#allocation5 + $0x5a0] sm:$0xff] }
  0x9c   :  { %v2141_v54 = vcombine.high %v90_v48, %v98_v49  ;;  %v241_v41 = vld [vmem:[#allocation5 + $0x5e0] sm:$0xff] }
  0x9e   :  { %1789 = vmatpush2.bf16.msra.mxu0 %v2262_v58  ;;  %1830 = vmatpush2.bf16.msra.mxu1 %v2264_v59  ;;  %v74_v58 = vld [vmem:[#allocation5 + $0xa8] sm:$0xff] }
  0x9f   :  { %1790 = vmatprep.subr.bf16.mxu0 %v2247_v60  ;;  %1831 = vmatprep.subr.bf16.mxu1 %v2249_v61  ;;  %v82_v59 = vld [vmem:[#allocation5 + $0xe8] sm:$0xff]  ;;  %v2138_v60 = vcombine.low %v89_v46, %v97_v47  ;;  %v2140_v61 = vcombine.low %v90_v48, %v98_v49  ;;  %v2283_v46 = vcombine.high %v233_v40, %v241_v41  ;;  %v217_v48 = vld [vmem:[#allocation5 + $0x520] sm:$0xff] }
  0xa0   :  { %v2125_v63 = vcombine.high %v74_v58, %v82_v59  ;;  %v225_v49 = vld [vmem:[#allocation5 + $0x560] sm:$0xff] }
  0xa2   :  { %1791 = vmatpush2.bf16.msra.mxu0 %v2246_v2  ;;  %1832 = vmatpush2.bf16.msra.mxu1 %v2248_v3  ;;  %v58_v2 = vld [vmem:[#allocation5 + $0x28] sm:$0xff] }
  0xa3   :  { %1792 = vmatprep.subr.bf16.mxu0 %v2231_v4  ;;  %1833 = vmatprep.subr.bf16.mxu1 %v2233_v5  ;;  %v66_v3 = vld [vmem:[#allocation5 + $0x68] sm:$0xff]  ;;  %v2122_v4 = vcombine.low %v73_v55, %v81_v56  ;;  %v2124_v5 = vcombine.low %v74_v58, %v82_v59  ;;  %v2267_v55 = vcombine.high %v217_v48, %v225_v49  ;;  %v201_v58 = vld [vmem:[#allocation5 + $0x4a0] sm:$0xff] }
  0xa4   :  { %v2109_v7 = vcombine.high %v58_v2, %v66_v3  ;;  %v209_v59 = vld [vmem:[#allocation5 + $0x4e0] sm:$0xff] }
  0xa6   :  { %1793 = vmatpush2.bf16.msra.mxu0 %v2230_v10  ;;  %1834 = vmatpush2.bf16.msra.mxu1 %v2232_v11  ;;  %v298_v10 = vld [vmem:[#allocation5 + $0x7a8] sm:$0xff] }
  0xa7   :  { %1844 = vmatprep.subr.bf16.mxu0 %v2219_v13  ;;  %1885 = vmatprep.subr.bf16.mxu1 %v2221_v14  ;;  %v306_v11 = vld [vmem:[#allocation5 + $0x7e8] sm:$0xff]  ;;  %v2106_v13 = vcombine.low %v57_v0, %v65_v1  ;;  %v2108_v14 = vcombine.low %v58_v2, %v66_v3  ;;  %v2251_v0 = vcombine.high %v201_v58, %v209_v59  ;;  %v185_v2 = vld [vmem:[#allocation5 + $0x420] sm:$0xff] }
  0xa8   :  { %v2349_v16 = vcombine.high %v298_v10, %v306_v11  ;;  %v193_v3 = vld [vmem:[#allocation5 + $0x460] sm:$0xff] }
  0xa9   :  { %1795 = vmatmul.mubr.bf16.vlgmr.msra.gmra.mxu0 %v2509_v12  ;;  %1836 = vmatmul.mubr.bf16.vlgmr.msra.gmra.mxu1 %v2509_v12 }
  0xaa   :  { %1845 = vmatpush1.bf16.msra.mxu0 %v2218_v19  ;;  %1886 = vmatpush1.bf16.msra.mxu1 %v2220_v20  ;;  %v282_v19 = vld [vmem:[#allocation5 + $0x728] sm:$0xff] }
  0xab   :  { %1846 = vmatprep.subr.bf16.mxu0 %v2203_v21  ;;  %1887 = vmatprep.subr.bf16.mxu1 %v2205_v22  ;;  %v290_v20 = vld [vmem:[#allocation5 + $0x768] sm:$0xff]  ;;  %v2346_v21 = vcombine.low %v297_v8, %v305_v9  ;;  %v2348_v22 = vcombine.low %v298_v10, %v306_v11  ;;  %v2235_v8 = vcombine.high %v185_v2, %v193_v3  ;;  %v171_v10 = vld [vmem:[#allocation5 + $0x3b0] sm:$0xff] }
  0xac   :  { %1876 = vmatprep.mubr.bf16.mxu0 %v2503_v57  ;;  %1917 = vmatprep.mubr.bf16.mxu1 %v2503_v57  ;;  %v2333_v23 = vcombine.high %v282_v19, %v290_v20  ;;  %v179_v11 = vld [vmem:[#allocation5 + $0x3f0] sm:$0xff] }
  0xae   :  { %1847 = vmatpush1.bf16.msra.mxu0 %v2202_v26  ;;  %1888 = vmatpush1.bf16.msra.mxu1 %v2204_v27  ;;  %v266_v26 = vld [vmem:[#allocation5 + $0x6a8] sm:$0xff] }
  0xaf   :  { %1848 = vmatprep.subr.bf16.mxu0 %v2187_v28  ;;  %1889 = vmatprep.subr.bf16.mxu1 %v2189_v29  ;;  %v274_v27 = vld [vmem:[#allocation5 + $0x6e8] sm:$0xff]  ;;  %v2330_v28 = vcombine.low %v281_v17, %v289_v18  ;;  %v2332_v29 = vcombine.low %v282_v19, %v290_v20  ;;  %v2223_v17 = vcombine.high %v171_v10, %v179_v11  ;;  %v155_v19 = vld [vmem:[#allocation5 + $0x330] sm:$0xff] }
  0xb0   :  { %v2317_v31 = vcombine.high %v266_v26, %v274_v27  ;;  %v163_v20 = vld [vmem:[#allocation5 + $0x370] sm:$0xff] }
  0xb2   :  { %1849 = vmatpush1.bf16.msra.mxu0 %v2186_v34  ;;  %1890 = vmatpush1.bf16.msra.mxu1 %v2188_v35  ;;  %v250_v34 = vld [vmem:[#allocation5 + $0x628] sm:$0xff] }
  0xb3   :  { %1850 = vmatprep.subr.bf16.mxu0 %v2171_v36  ;;  %1891 = vmatprep.subr.bf16.mxu1 %v2173_v37  ;;  %v258_v35 = vld [vmem:[#allocation5 + $0x668] sm:$0xff]  ;;  %v2314_v36 = vcombine.low %v265_v24, %v273_v25  ;;  %v2316_v37 = vcombine.low %v266_v26, %v274_v27  ;;  %v2207_v24 = vcombine.high %v155_v19, %v163_v20  ;;  %v139_v26 = vld [vmem:[#allocation5 + $0x2b0] sm:$0xff] }
  0xb4   :  { %v2301_v39 = vcombine.high %v250_v34, %v258_v35  ;;  %v147_v27 = vld [vmem:[#allocation5 + $0x2f0] sm:$0xff] }
  0xb6   :  { %1851 = vmatpush1.bf16.msra.mxu0 %v2170_v42  ;;  %1892 = vmatpush1.bf16.msra.mxu1 %v2172_v43  ;;  %v234_v42 = vld [vmem:[#allocation5 + $0x5a8] sm:$0xff] }
  0xb7   :  { %1852 = vmatprep.subr.bf16.mxu0 %v2155_v44  ;;  %1893 = vmatprep.subr.bf16.mxu1 %v2157_v45  ;;  %v242_v43 = vld [vmem:[#allocation5 + $0x5e8] sm:$0xff]  ;;  %v2298_v44 = vcombine.low %v249_v32, %v257_v33  ;;  %v2300_v45 = vcombine.low %v250_v34, %v258_v35  ;;  %v2191_v32 = vcombine.high %v139_v26, %v147_v27  ;;  %v123_v34 = vld [vmem:[#allocation5 + $0x230] sm:$0xff] }
  0xb8   :  { %v2285_v47 = vcombine.high %v234_v42, %v242_v43  ;;  %v131_v35 = vld [vmem:[#allocation5 + $0x270] sm:$0xff] }
  0xba   :  { %1853 = vmatpush1.bf16.msra.mxu0 %v2154_v50  ;;  %1894 = vmatpush1.bf16.msra.mxu1 %v2156_v51  ;;  %v218_v50 = vld [vmem:[#allocation5 + $0x528] sm:$0xff] }
  0xbb   :  { %1854 = vmatprep.subr.bf16.mxu0 %v2139_v52  ;;  %1895 = vmatprep.subr.bf16.mxu1 %v2141_v54  ;;  %v226_v51 = vld [vmem:[#allocation5 + $0x568] sm:$0xff]  ;;  %v2282_v52 = vcombine.low %v233_v40, %v241_v41  ;;  %v2284_v54 = vcombine.low %v234_v42, %v242_v43  ;;  %v2175_v40 = vcombine.high %v123_v34, %v131_v35  ;;  %v107_v42 = vld [vmem:[#allocation5 + $0x1b0] sm:$0xff] }
  0xbc   :  { %v2269_v56 = vcombine.high %v218_v50, %v226_v51  ;;  %v115_v43 = vld [vmem:[#allocation5 + $0x1f0] sm:$0xff] }
  0xbe   :  { %1855 = vmatpush1.bf16.msra.mxu0 %v2138_v60  ;;  %1896 = vmatpush1.bf16.msra.mxu1 %v2140_v61  ;;  %v202_v60 = vld [vmem:[#allocation5 + $0x4a8] sm:$0xff] }
  0xbf   :  { %1856 = vmatprep.subr.bf16.mxu0 %v2123_v62  ;;  %1897 = vmatprep.subr.bf16.mxu1 %v2125_v63  ;;  %v210_v61 = vld [vmem:[#allocation5 + $0x4e8] sm:$0xff]  ;;  %v2266_v62 = vcombine.low %v217_v48, %v225_v49  ;;  %v2268_v63 = vcombine.low %v218_v50, %v226_v51  ;;  %v2159_v48 = vcombine.high %v107_v42, %v115_v43  ;;  %v91_v49 = vld [vmem:[#allocation5 + $0x130] sm:$0xff]  ;;  %v92_v51 = vld [vmem:[#allocation5 + $0x138] sm:$0xff] }
  0xc0   :  { %v2253_v1 = vcombine.high %v202_v60, %v210_v61  ;;  %v99_v50 = vld [vmem:[#allocation5 + $0x170] sm:$0xff] }
  0xc2   :  { %1857 = vmatpush1.bf16.msra.mxu0 %v2122_v4  ;;  %1898 = vmatpush1.bf16.msra.mxu1 %v2124_v5  ;;  %v186_v4 = vld [vmem:[#allocation5 + $0x428] sm:$0xff] }
  0xc3   :  { %1858 = vmatprep.subr.bf16.mxu0 %v2107_v6  ;;  %1899 = vmatprep.subr.bf16.mxu1 %v2109_v7  ;;  %v194_v5 = vld [vmem:[#allocation5 + $0x468] sm:$0xff]  ;;  %v2250_v6 = vcombine.low %v201_v58, %v209_v59  ;;  %v2252_v7 = vcombine.low %v202_v60, %v210_v61  ;;  %v75_v59 = vld [vmem:[#allocation5 + $0xb0] sm:$0xff]  ;;  %v76_v61 = vld [vmem:[#allocation5 + $0xb8] sm:$0xff] }
  0xc4   :  { %v2237_v9 = vcombine.high %v186_v4, %v194_v5  ;;  %v83_v60 = vld [vmem:[#allocation5 + $0xf0] sm:$0xff] }
  0xc6   :  { %1859 = vmatpush1.bf16.msra.mxu0 %v2106_v13  ;;  %1900 = vmatpush1.bf16.msra.mxu1 %v2108_v14  ;;  %v172_v13 = vld [vmem:[#allocation5 + $0x3b8] sm:$0xff] }
  0xc7   :  { %1860 = vmatprep.subr.bf16.mxu0 %v2347_v15  ;;  %1901 = vmatprep.subr.bf16.mxu1 %v2349_v16  ;;  %v180_v14 = vld [vmem:[#allocation5 + $0x3f8] sm:$0xff]  ;;  %v2234_v15 = vcombine.low %v185_v2, %v193_v3  ;;  %v2236_v16 = vcombine.low %v186_v4, %v194_v5  ;;  %v59_v3 = vld [vmem:[#allocation5 + $0x30] sm:$0xff] }
  0xc8   :  { %v2225_v18 = vcombine.high %v172_v13, %v180_v14  ;;  %v67_v4 = vld [vmem:[#allocation5 + $0x70] sm:$0xff]  ;;  %v60_v5 = vld [vmem:[#allocation5 + $0x38] sm:$0xff] }
  0xca   :  { %1861 = vmatpush2.bf16.msra.mxu0 %v2346_v21  ;;  %1902 = vmatpush2.bf16.msra.mxu1 %v2348_v22  ;;  %v156_v21 = vld [vmem:[#allocation5 + $0x338] sm:$0xff] }
  0xcb   :  { %1862 = vmatprep.subr.bf16.mxu0 %v2331_v53  ;;  %1903 = vmatprep.subr.bf16.mxu1 %v2333_v23  ;;  %v164_v22 = vld [vmem:[#allocation5 + $0x378] sm:$0xff]  ;;  %v2222_v53 = vcombine.low %v171_v10, %v179_v11  ;;  %v2224_v23 = vcombine.low %v172_v13, %v180_v14  ;;  %v299_v11 = vld [vmem:[#allocation5 + $0x7b0] sm:$0xff] }
  0xcc   :  { %v2209_v25 = vcombine.high %v156_v21, %v164_v22  ;;  %v307_v13 = vld [vmem:[#allocation5 + $0x7f0] sm:$0xff]  ;;  %v300_v14 = vld [vmem:[#allocation5 + $0x7b8] sm:$0xff] }
  0xce   :  { %1863 = vmatpush2.bf16.msra.mxu0 %v2330_v28  ;;  %1904 = vmatpush2.bf16.msra.mxu1 %v2332_v29  ;;  %v140_v28 = vld [vmem:[#allocation5 + $0x2b8] sm:$0xff] }
  0xcf   :  { %1864 = vmatprep.subr.bf16.mxu0 %v2315_v30  ;;  %1905 = vmatprep.subr.bf16.mxu1 %v2317_v31  ;;  %v148_v29 = vld [vmem:[#allocation5 + $0x2f8] sm:$0xff]  ;;  %v2206_v30 = vcombine.low %v155_v19, %v163_v20  ;;  %v2208_v31 = vcombine.low %v156_v21, %v164_v22  ;;  %v283_v20 = vld [vmem:[#allocation5 + $0x730] sm:$0xff] }
  0xd0   :  { %v2193_v33 = vcombine.high %v140_v28, %v148_v29  ;;  %v291_v21 = vld [vmem:[#allocation5 + $0x770] sm:$0xff]  ;;  %v284_v22 = vld [vmem:[#allocation5 + $0x738] sm:$0xff] }
  0xd2   :  { %1865 = vmatpush2.bf16.msra.mxu0 %v2314_v36  ;;  %1906 = vmatpush2.bf16.msra.mxu1 %v2316_v37  ;;  %v124_v36 = vld [vmem:[#allocation5 + $0x238] sm:$0xff] }
  0xd3   :  { %1866 = vmatprep.subr.bf16.mxu0 %v2299_v38  ;;  %1907 = vmatprep.subr.bf16.mxu1 %v2301_v39  ;;  %v132_v37 = vld [vmem:[#allocation5 + $0x278] sm:$0xff]  ;;  %v2190_v38 = vcombine.low %v139_v26, %v147_v27  ;;  %v2192_v39 = vcombine.low %v140_v28, %v148_v29  ;;  %v267_v27 = vld [vmem:[#allocation5 + $0x6b0] sm:$0xff] }
  0xd4   :  { %v2177_v41 = vcombine.high %v124_v36, %v132_v37  ;;  %v275_v28 = vld [vmem:[#allocation5 + $0x6f0] sm:$0xff]  ;;  %v268_v29 = vld [vmem:[#allocation5 + $0x6b8] sm:$0xff] }
  0xd6   :  { %1867 = vmatpush2.bf16.msra.mxu0 %v2298_v44  ;;  %1908 = vmatpush2.bf16.msra.mxu1 %v2300_v45  ;;  %v108_v44 = vld [vmem:[#allocation5 + $0x1b8] sm:$0xff] }
  0xd7   :  { %1868 = vmatprep.subr.bf16.mxu0 %v2283_v46  ;;  %1909 = vmatprep.subr.bf16.mxu1 %v2285_v47  ;;  %v116_v45 = vld [vmem:[#allocation5 + $0x1f8] sm:$0xff]  ;;  %v2174_v46 = vcombine.low %v123_v34, %v131_v35  ;;  %v2176_v47 = vcombine.low %v124_v36, %v132_v37  ;;  %v251_v35 = vld [vmem:[#allocation5 + $0x630] sm:$0xff] }
  0xd8   :  { %v259_v36 = vld [vmem:[#allocation5 + $0x670] sm:$0xff]  ;;  %v252_v37 = vld [vmem:[#allocation5 + $0x638] sm:$0xff] }
  0xda   :  { %1869 = vmatpush2.bf16.msra.mxu0 %v2282_v52  ;;  %1910 = vmatpush2.bf16.msra.mxu1 %v2284_v54  ;;  %v100_v52 = vld [vmem:[#allocation5 + $0x178] sm:$0xff]  ;;  %v2158_v54 = vcombine.low %v107_v42, %v115_v43  ;;  %v235_v43 = vld [vmem:[#allocation5 + $0x5b0] sm:$0xff] }
  0xdb   :  { %1870 = vmatprep.subr.bf16.mxu0 %v2267_v55  ;;  %1911 = vmatprep.subr.bf16.mxu1 %v2269_v56  ;;  %v2160_v55 = vcombine.low %v108_v44, %v116_v45  ;;  %v2143_v56 = vcombine.high %v91_v49, %v99_v50  ;;  %v2145_v58 = vcombine.high %v92_v51, %v100_v52 }
  0xde   :  { %1871 = vmatpush2.bf16.msra.mxu0 %v2266_v62  ;;  %1912 = vmatpush2.bf16.msra.mxu1 %v2268_v63  ;;  %v84_v62 = vld [vmem:[#allocation5 + $0xf8] sm:$0xff]  ;;  %v2142_v63 = vcombine.low %v91_v49, %v99_v50  ;;  %v219_v50 = vld [vmem:[#allocation5 + $0x530] sm:$0xff] }
  0xdf   :  { %1872 = vmatprep.subr.bf16.mxu0 %v2251_v0  ;;  %1913 = vmatprep.subr.bf16.mxu1 %v2253_v1  ;;  %v2144_v0 = vcombine.low %v92_v51, %v100_v52  ;;  %v2127_v1 = vcombine.high %v75_v59, %v83_v60  ;;  %v2129_v2 = vcombine.high %v76_v61, %v84_v62  ;;  %v227_v51 = vld [vmem:[#allocation5 + $0x570] sm:$0xff]  ;;  %v220_v52 = vld [vmem:[#allocation5 + $0x538] sm:$0xff] }
  0xe2   :  { %1873 = vmatpush2.bf16.msra.mxu0 %v2250_v6  ;;  %1914 = vmatpush2.bf16.msra.mxu1 %v2252_v7  ;;  %v68_v6 = vld [vmem:[#allocation5 + $0x78] sm:$0xff]  ;;  %v2126_v7 = vcombine.low %v75_v59, %v83_v60  ;;  %v203_v60 = vld [vmem:[#allocation5 + $0x4b0] sm:$0xff] }
  0xe3   :  { %1874 = vmatprep.subr.bf16.mxu0 %v2235_v8  ;;  %1915 = vmatprep.subr.bf16.mxu1 %v2237_v9  ;;  %v2128_v8 = vcombine.low %v76_v61, %v84_v62  ;;  %v2111_v9 = vcombine.high %v59_v3, %v67_v4  ;;  %v2113_v10 = vcombine.high %v60_v5, %v68_v6  ;;  %v211_v61 = vld [vmem:[#allocation5 + $0x4f0] sm:$0xff]  ;;  %v204_v62 = vld [vmem:[#allocation5 + $0x4b8] sm:$0xff] }
  0xe6   :  { %1875 = vmatpush2.bf16.msra.mxu0 %v2234_v15  ;;  %1916 = vmatpush2.bf16.msra.mxu1 %v2236_v16  ;;  %v308_v15 = vld [vmem:[#allocation5 + $0x7f8] sm:$0xff]  ;;  %v2110_v16 = vcombine.low %v59_v3, %v67_v4  ;;  %v2255_v3 = vcombine.high %v203_v60, %v211_v61 }
  0xe7   :  { %1926 = vmatprep.subr.bf16.mxu0 %v2223_v17  ;;  %1967 = vmatprep.subr.bf16.mxu1 %v2225_v18  ;;  %v2112_v17 = vcombine.low %v60_v5, %v68_v6  ;;  %v2351_v18 = vcombine.high %v299_v11, %v307_v13  ;;  %v2353_v19 = vcombine.high %v300_v14, %v308_v15  ;;  %v187_v5 = vld [vmem:[#allocation5 + $0x430] sm:$0xff] }
  0xe8   :  { %v195_v6 = vld [vmem:[#allocation5 + $0x470] sm:$0xff] }
  0xe9   :  { %1877 = vmatmul.mubr.bf16.vlgmr.msra.gmra.mxu0 %v2509_v12  ;;  %1918 = vmatmul.mubr.bf16.vlgmr.msra.gmra.mxu1 %v2509_v12 }
  0xea   :  { %1927 = vmatpush1.bf16.msra.mxu0 %v2222_v53  ;;  %1968 = vmatpush1.bf16.msra.mxu1 %v2224_v23  ;;  %v292_v53 = vld [vmem:[#allocation5 + $0x778] sm:$0xff]  ;;  %v2350_v23 = vcombine.low %v299_v11, %v307_v13  ;;  %v2239_v13 = vcombine.high %v187_v5, %v195_v6 }
  0xeb   :  { %1928 = vmatprep.subr.bf16.mxu0 %v2207_v24  ;;  %1969 = vmatprep.subr.bf16.mxu1 %v2209_v25  ;;  %v2352_v24 = vcombine.low %v300_v14, %v308_v15  ;;  %v2335_v25 = vcombine.high %v283_v20, %v291_v21  ;;  %v2337_v26 = vcombine.high %v284_v22, %v292_v53 }
  0xec   :  { %1958 = vmatprep.mubr.bf16.mxu0 %v2503_v57  ;;  %1999 = vmatprep.mubr.bf16.mxu1 %v2503_v57  ;;  %v2161_v57 = vcombine.high %v108_v44, %v116_v45  ;;  %v243_v44 = vld [vmem:[#allocation5 + $0x5f0] sm:$0xff]  ;;  %v236_v45 = vld [vmem:[#allocation5 + $0x5b8] sm:$0xff]  ;;  %v2238_v15 = vcombine.low %v187_v5, %v195_v6 }
  0xee   :  { %1929 = vmatpush1.bf16.msra.mxu0 %v2206_v30  ;;  %1970 = vmatpush1.bf16.msra.mxu1 %v2208_v31  ;;  %v276_v30 = vld [vmem:[#allocation5 + $0x6f8] sm:$0xff]  ;;  %v2334_v31 = vcombine.low %v283_v20, %v291_v21 }
  0xef   :  { %1930 = vmatprep.subr.bf16.mxu0 %v2191_v32  ;;  %1971 = vmatprep.subr.bf16.mxu1 %v2193_v33  ;;  %v2336_v32 = vcombine.low %v284_v22, %v292_v53  ;;  %v2319_v33 = vcombine.high %v267_v27, %v275_v28  ;;  %v2321_v34 = vcombine.high %v268_v29, %v276_v30 }
  0xf2   :  { %1931 = vmatpush1.bf16.msra.mxu0 %v2190_v38  ;;  %1972 = vmatpush1.bf16.msra.mxu1 %v2192_v39  ;;  %v260_v38 = vld [vmem:[#allocation5 + $0x678] sm:$0xff]  ;;  %v2318_v39 = vcombine.low %v267_v27, %v275_v28 }
  0xf3   :  { %1932 = vmatprep.subr.bf16.mxu0 %v2175_v40  ;;  %1973 = vmatprep.subr.bf16.mxu1 %v2177_v41  ;;  %v2320_v40 = vcombine.low %v268_v29, %v276_v30  ;;  %v2303_v41 = vcombine.high %v251_v35, %v259_v36  ;;  %v2305_v42 = vcombine.high %v252_v37, %v260_v38 }
  0xf6   :  { %1933 = vmatpush1.bf16.msra.mxu0 %v2174_v46  ;;  %1974 = vmatpush1.bf16.msra.mxu1 %v2176_v47  ;;  %v244_v46 = vld [vmem:[#allocation5 + $0x5f8] sm:$0xff]  ;;  %v2302_v47 = vcombine.low %v251_v35, %v259_v36 }
  0xf7   :  { %1934 = vmatprep.subr.bf16.mxu0 %v2159_v48  ;;  %1975 = vmatprep.subr.bf16.mxu1 %v2161_v57  ;;  %v2304_v48 = vcombine.low %v252_v37, %v260_v38  ;;  %v2287_v57 = vcombine.high %v235_v43, %v243_v44  ;;  %v2289_v49 = vcombine.high %v236_v45, %v244_v46 }
  0xfa   :  { %1935 = vmatpush1.bf16.msra.mxu0 %v2158_v54  ;;  %1976 = vmatpush1.bf16.msra.mxu1 %v2160_v55  ;;  %v228_v54 = vld [vmem:[#allocation5 + $0x578] sm:$0xff]  ;;  %v2286_v55 = vcombine.low %v235_v43, %v243_v44 }
  0xfb   :  { %1936 = vmatprep.subr.bf16.mxu0 %v2143_v56  ;;  %1977 = vmatprep.subr.bf16.mxu1 %v2145_v58  ;;  %v2288_v56 = vcombine.low %v236_v45, %v244_v46  ;;  %v2271_v58 = vcombine.high %v219_v50, %v227_v51  ;;  %v2273_v59 = vcombine.high %v220_v52, %v228_v54 }
  0xfe   :  { %1937 = vmatpush1.bf16.msra.mxu0 %v2142_v63  ;;  %1978 = vmatpush1.bf16.msra.mxu1 %v2144_v0  ;;  %v212_v63 = vld [vmem:[#allocation5 + $0x4f8] sm:$0xff]  ;;  %v2270_v0 = vcombine.low %v219_v50, %v227_v51 }
  0xff   :  { %1938 = vmatprep.subr.bf16.mxu0 %v2127_v1  ;;  %1979 = vmatprep.subr.bf16.mxu1 %v2129_v2  ;;  %v313_v1 = vlaneseq  ;;  %v2272_v2 = vcombine.low %v220_v52, %v228_v54  ;;  %v2257_v4 = vcombine.high %v204_v62, %v212_v63  ;;  %v2256_v11 = vcombine.low %v204_v62, %v212_v63 }
 0x102   :  { %1939 = vmatpush1.bf16.msra.mxu0 %v2126_v7  ;;  %1980 = vmatpush1.bf16.msra.mxu1 %v2128_v8  ;;  %v188_v7 = vld [vmem:[#allocation5 + $0x438] sm:$0xff] }
 0x103   :  { %1940 = vmatprep.subr.bf16.mxu0 %v2111_v9  ;;  %1981 = vmatprep.subr.bf16.mxu1 %v2113_v10  ;;  %v196_v8 = vld [vmem:[#allocation5 + $0x478] sm:$0xff]  ;;  %v2254_v9 = vcombine.low %v203_v60, %v211_v61  ;;  %v2523_v10 = vshrl.u32 %v313_v1, 7  ;;  %v310_v61 = vld [vmem:[#allocation7 + $0x8] sm:$0xff] }
 0x104   :  { %v2241_v14 = vcombine.high %v188_v7, %v196_v8 }
 0x105   :  { %v319_v20 = vsub.s32 1, %v2523_v10  ;;  %v327_v21 = vsub.s32 3, %v2523_v10 }
 0x106   :  { %1941 = vmatpush1.bf16.msra.mxu0 %v2110_v16  ;;  %1982 = vmatpush1.bf16.msra.mxu1 %v2112_v17  ;;  %v315_v16 = vsub.s32 0, %v2523_v10  ;;  %v2240_v17 = vcombine.low %v188_v7, %v196_v8 }
 0x107   :  { %1942 = vmatprep.subr.bf16.mxu0 %v2351_v18  ;;  %1983 = vmatprep.subr.bf16.mxu1 %v2353_v19  ;;  %v309_v18 = vld [vmem:[#allocation7] sm:$0xff]  ;;  %v323_v19 = vsub.s32 2, %v2523_v10 }
 0x108   :  { %v316_v22 = vrot.slane %v309_v18, %v315_v16  ;;  %v348_v62 = vrot.slane %v310_v61, %v315_v16 }
 0x109   :  { %v324_v53 = vrot.slane %v309_v18, %v323_v19  ;;  %v356_v63 = vrot.slane %v310_v61, %v323_v19 }
 0x10a   :  { %1943 = vmatpush2.bf16.msra.mxu0 %v2350_v23  ;;  %1984 = vmatpush2.bf16.msra.mxu1 %v2352_v24  ;;  %v320_v23 = vrot.slane %v309_v18, %v319_v20 }
 0x10b   :  { %1944 = vmatprep.subr.bf16.mxu0 %v2335_v25  ;;  %1985 = vmatprep.subr.bf16.mxu1 %v2337_v26  ;;  %v328_v25 = vrot.slane %v309_v18, %v327_v21 }
 0x10e   :  { %1945 = vmatpush2.bf16.msra.mxu0 %v2334_v31  ;;  %1986 = vmatpush2.bf16.msra.mxu1 %v2336_v32 }
 0x10f   :  { %1946 = vmatprep.subr.bf16.mxu0 %v2319_v33  ;;  %1987 = vmatprep.subr.bf16.mxu1 %v2321_v34 }
 0x112   :  { %1947 = vmatpush2.bf16.msra.mxu0 %v2318_v39  ;;  %1988 = vmatpush2.bf16.msra.mxu1 %v2320_v40  ;;  %v331_v39 = vsub.s32 4, %v2523_v10  ;;  %v339_v40 = vsub.s32 6, %v2523_v10 }
 0x113   :  { %1948 = vmatprep.subr.bf16.mxu0 %v2303_v41  ;;  %1989 = vmatprep.subr.bf16.mxu1 %v2305_v42  ;;  %v335_v41 = vsub.s32 5, %v2523_v10 }
 0x114   :  { %v332_v42 = vrot.slane %v309_v18, %v331_v39  ;;  %v340_v43 = vrot.slane %v309_v18, %v339_v40  ;;  %v364_v16 = vrot.slane %v310_v61, %v331_v39 }
 0x115   :  { %v336_v44 = vrot.slane %v309_v18, %v335_v41 }
 0x116   :  { %1949 = vmatpush2.bf16.msra.mxu0 %v2302_v47  ;;  %1990 = vmatpush2.bf16.msra.mxu1 %v2304_v48 }
 0x117   :  { %1950 = vmatprep.subr.bf16.mxu0 %v2287_v57  ;;  %1991 = vmatprep.subr.bf16.mxu1 %v2289_v49 }
 0x11a   :  { %1951 = vmatpush2.bf16.msra.mxu0 %v2286_v55  ;;  %1992 = vmatpush2.bf16.msra.mxu1 %v2288_v56 }
 0x11b   :  { %1952 = vmatprep.subr.bf16.mxu0 %v2271_v58  ;;  %1993 = vmatprep.subr.bf16.mxu1 %v2273_v59 }
 0x11e   :  { %1953 = vmatpush2.bf16.msra.mxu0 %v2270_v0  ;;  %1994 = vmatpush2.bf16.msra.mxu1 %v2272_v2  ;;  %v352_v0 = vrot.slane %v310_v61, %v319_v20  ;;  %v360_v2 = vrot.slane %v310_v61, %v327_v21  ;;  %v372_v20 = vrot.slane %v310_v61, %v339_v40 }
 0x11f   :  { %1954 = vmatprep.subr.bf16.mxu0 %v2255_v3  ;;  %1995 = vmatprep.subr.bf16.mxu1 %v2257_v4 }
 0x122   :  { %1955 = vmatpush2.bf16.msra.mxu0 %v2254_v9  ;;  %1996 = vmatpush2.bf16.msra.mxu1 %v2256_v11 }
 0x123   :  { %1956 = vmatprep.subr.bf16.mxu0 %v2239_v13  ;;  %1997 = vmatprep.subr.bf16.mxu1 %v2241_v14 }
 0x126   :  { %1957 = vmatpush2.bf16.msra.mxu0 %v2238_v15  ;;  %1998 = vmatpush2.bf16.msra.mxu1 %v2240_v17 }
 0x129   :  { %v1714_v24 = vpop.f32.mrf.mxu0  ;;  %1959 = vmatmul.mubr.bf16.vlgmr.msra.gmra.mxu0 %v2509_v12  ;;  %v1755_v27 = vpop.f32.mrf.mxu1  ;;  %2000 = vmatmul.mubr.bf16.vlgmr.msra.gmra.mxu1 %v2509_v12  ;;  %v343_v12 = vsub.s32 7, %v2523_v10 }
 0x12a   :  { %v1715_v26 = vadd.f32 %v1714_v24, %v316_v22  ;;  %v1756_v28 = vadd.f32 %v1755_v27, %v324_v53 }
 0x12b   :  { %v1716_v29 = vpop.f32.mrf.mxu0  ;;  %v1757_v31 = vpop.f32.mrf.mxu1  ;;  %v344_v46 = vrot.slane %v309_v18, %v343_v12  ;;  %v368_v18 = vrot.slane %v310_v61, %v335_v41  ;;  %v376_v21 = vrot.slane %v310_v61, %v343_v12 }
 0x12c   :  { %v1717_v30 = vadd.f32 %v1716_v29, %v320_v23  ;;  %v1758_v32 = vadd.f32 %v1757_v31, %v328_v25 }
 0x12d   :  { %v1718_v33 = vpop.f32.mrf.mxu0  ;;  %v1759_v35 = vpop.f32.mrf.mxu1 }
 0x12e   :  { %v2362_v34 = vpack.c.bf16 %v1717_v30, %v1715_v26  ;;  %v2363_v36 = vpack.c.bf16 %v1758_v32, %v1756_v28 }
 0x12f   :  { %v1719_v37 = vpop.f32.mrf.mxu0  ;;  %v1760_v38 = vpop.f32.mrf.mxu1 }
 0x130   :  { %2072 = vst [vmem:[#allocation8] sm:$0xff] %v2362_v34  ;;  %2073 = vst [vmem:[#allocation8 + $0x8] sm:$0xff] %v2363_v36 }
 0x169   :  { %v1796_v45 = vpop.f32.mrf.mxu0  ;;  %v1837_v48 = vpop.f32.mrf.mxu1 }
 0x16a   :  { %v1797_v47 = vadd.f32 %v1796_v45, %v332_v42  ;;  %v1838_v57 = vadd.f32 %v1837_v48, %v340_v43 }
 0x16b   :  { %v1798_v49 = vpop.f32.mrf.mxu0  ;;  %v1839_v51 = vpop.f32.mrf.mxu1 }
 0x16c   :  { %v1799_v50 = vadd.f32 %v1798_v49, %v336_v44  ;;  %v1840_v52 = vadd.f32 %v1839_v51, %v344_v46 }
 0x16d   :  { %v1800_v54 = vpop.f32.mrf.mxu0  ;;  %v1841_v56 = vpop.f32.mrf.mxu1 }
 0x16e   :  { %v2364_v55 = vpack.c.bf16 %v1799_v50, %v1797_v47  ;;  %v2365_v58 = vpack.c.bf16 %v1840_v52, %v1838_v57 }
 0x16f   :  { %v1801_v59 = vpop.f32.mrf.mxu0  ;;  %v1842_v60 = vpop.f32.mrf.mxu1 }
 0x170   :  { %2074 = vst [vmem:[#allocation8 + $0x10] sm:$0xff] %v2364_v55  ;;  %2075 = vst [vmem:[#allocation8 + $0x18] sm:$0xff] %v2365_v58 }
 0x1a9   :  { %v1878_v1 = vpop.f32.mrf.mxu0  ;;  %v1919_v4 = vpop.f32.mrf.mxu1 }
 0x1aa   :  { %v1879_v3 = vadd.f32 %v1878_v1, %v348_v62  ;;  %v1920_v5 = vadd.f32 %v1919_v4, %v356_v63 }
 0x1ab   :  { %v1880_v6 = vpop.f32.mrf.mxu0  ;;  %v1921_v8 = vpop.f32.mrf.mxu1 }
 0x1ac   :  { %v1881_v7 = vadd.f32 %v1880_v6, %v352_v0  ;;  %v1922_v9 = vadd.f32 %v1921_v8, %v360_v2 }
 0x1ad   :  { %v1882_v10 = vpop.f32.mrf.mxu0  ;;  %v1923_v13 = vpop.f32.mrf.mxu1 }
 0x1ae   :  { %v2366_v11 = vpack.c.bf16 %v1881_v7, %v1879_v3  ;;  %v2367_v14 = vpack.c.bf16 %v1922_v9, %v1920_v5 }
 0x1af   :  { %v1883_v15 = vpop.f32.mrf.mxu0  ;;  %v1924_v17 = vpop.f32.mrf.mxu1 }
 0x1b0   :  { %2076 = vst [vmem:[#allocation8 + $0x20] sm:$0xff] %v2366_v11  ;;  %2077 = vst [vmem:[#allocation8 + $0x28] sm:$0xff] %v2367_v14 }
 0x1e9   :  { %v1960_v19 = vpop.f32.mrf.mxu0  ;;  %v2001_v22 = vpop.f32.mrf.mxu1 }
 0x1ea   :  { %v1961_v23 = vadd.f32 %v1960_v19, %v364_v16  ;;  %v2002_v26 = vadd.f32 %v2001_v22, %v372_v20 }
 0x1eb   :  { %v1962_v53 = vpop.f32.mrf.mxu0  ;;  %v2003_v25 = vpop.f32.mrf.mxu1 }
 0x1ec   :  { %v1963_v24 = vadd.f32 %v1962_v53, %v368_v18  ;;  %v2004_v27 = vadd.f32 %v2003_v25, %v376_v21 }
 0x1ed   :  { %v1964_v28 = vpop.f32.mrf.mxu0  ;;  %v2005_v30 = vpop.f32.mrf.mxu1 }
 0x1ee   :  { %v2368_v29 = vpack.c.bf16 %v1963_v24, %v1961_v23  ;;  %v2369_v31 = vpack.c.bf16 %v2004_v27, %v2002_v26 }
 0x1ef   :  { %v1965_v32 = vpop.f32.mrf.mxu0  ;;  %v2006_v33 = vpop.f32.mrf.mxu1 }
 0x1f0   :  { %2078 = vst [vmem:[#allocation8 + $0x30] sm:$0xff] %v2368_v29  ;;  %2079 = vst [vmem:[#allocation8 + $0x38] sm:$0xff] %v2369_v31 }
 0x1f1   :  { %2449 = shalt.err (!%p2446_p5)
}
 0x1f2   :  { %2089 = dma.vmem_to_hbm [thread:$0]  %s2087_s2, 1024, %s2541_s3, [#allocation4]  }
 0x1f3   :  { %2462 = dma.done.wait [#allocation4], 1024  }
 0x1f4   :  { %2463 = vsyncadd [#allocation4], 4294966272 }
 0x1f5   :  { %2093 = vsyncpa [#allocation3], 1 }
 0x1f6   :  { %2094 = vsyncpa [#allocation6], 1 }
 0x1f7   :  { %2095 = vsyncpa [#allocation4], 1 }

</bundles_post_ra>
